<compile_context>
chip_gen: v7x
topology: tpu7x:2x2x1
jax: 0.10.0
libtpu: 0.0.40
codegen_flags: <defaults>
</compile_context>

<pallas_src>
import functools

import jax
import jax.numpy as jnp
from jax import lax
from jax.experimental import pallas as pl
from jax.experimental.pallas import tpu as pltpu


LANE = 128  # lane-dense padding for the classifier output

# Stand-in config: hidden / 3*hidden / intermediate all multiples of 128.
CFG = dict(hidden=128, heads=2, layers=2, intermediate=256,
           vocab=100, max_pos=64, coord=32, labels=5, eps=1e-12)


# ------------------------------ in-kernel math -------------------------------

def _erf(x):
    # Abramowitz & Stegun 7.1.26 (max abs err ~1.5e-7): exact-GELU compatible.
    a1, a2, a3, a4, a5 = 0.254829592, -0.284496736, 1.421413741, -1.453152027, 1.061405429
    p = 0.3275911
    ax = jnp.abs(x)
    t = 1.0 / (1.0 + p * ax)
    poly = ((((a5 * t + a4) * t + a3) * t + a2) * t + a1) * t
    y = 1.0 - poly * jnp.exp(-ax * ax)
    return jnp.where(x < 0.0, -y, y)


def _gelu_exact(x):
    return 0.5 * x * (1.0 + _erf(x * 0.7071067811865476))


# ------------------------------ fused kernel ---------------------------------

def _encoder_kernel(emb_ref, bias_ref, emb_g_ref, emb_b_ref,
                    wqkv_ref, bqkv_ref, wo_ref, bo_ref,
                    ln1_g_ref, ln1_b_ref,
                    w1_ref, b1_ref, w2_ref, b2_ref,
                    ln2_g_ref, ln2_b_ref,
                    cls_w_ref, cls_b_ref,
                    out_ref, *, num_heads, eps):
    """Grid = (batch,).  One step = embedding LN -> all layers -> classifier."""
    S, H = emb_ref.shape
    d = H // num_heads
    n_layers = wqkv_ref.shape[0]

    def layernorm(x, g, b):
        mean = jnp.mean(x, axis=-1, keepdims=True)
        cent = x - mean
        var = jnp.mean(cent * cent, axis=-1, keepdims=True)
        return cent * lax.rsqrt(var + eps) * g + b

    # Embedding LayerNorm (read exactly once; no residency across grid steps).
    x0 = layernorm(emb_ref[...].astype(jnp.float32),
                   emb_g_ref[...], emb_b_ref[...])

    # Additive attention-mask bias, broadcast over (nH, S, S); hoisted once.
    bias = bias_ref[...]                    # (1, 1, S), f32

    def split_heads(mat):                   # (S, H) -> (nH, S, d)
        return jnp.transpose(mat.reshape(S, num_heads, d), (1, 0, 2))

    def layer(l, x):
        # Fused QKV projection: one MXU call, bf16 inputs, f32 accumulation.
        qkv = jnp.dot(x.astype(jnp.bfloat16), wqkv_ref[l],
                      preferred_element_type=jnp.float32) + bqkv_ref[l]
        q = split_heads(qkv[:, :H]).astype(jnp.bfloat16)   # 1/sqrt(d) folded in
        k = split_heads(qkv[:, H:2 * H]).astype(jnp.bfloat16)
        v = split_heads(qkv[:, 2 * H:]).astype(jnp.bfloat16)

        # All heads in one batched matmul (heads = batch dim).
        s = jnp.einsum('hqd,hkd->hqk', q, k,
                       preferred_element_type=jnp.float32)         # (nH, S, S)
        s = s + bias
        s = s - jnp.max(s, axis=-1, keepdims=True)                 # f32 softmax
        p = jnp.exp(s)
        p = p * pl.reciprocal(jnp.sum(p, axis=-1, keepdims=True), approx=True)
        ctx = jnp.einsum('hqk,hkd->hqd', p.astype(jnp.bfloat16), v,
                         preferred_element_type=jnp.float32)       # (nH, S, d)
        ctx = jnp.transpose(ctx, (1, 0, 2)).reshape(S, H)

        attn = jnp.dot(ctx.astype(jnp.bfloat16), wo_ref[l],
                       preferred_element_type=jnp.float32) + bo_ref[l]
        x1 = layernorm(attn + x, ln1_g_ref[l], ln1_b_ref[l])

        hid = jnp.dot(x1.astype(jnp.bfloat16), w1_ref[l],
                      preferred_element_type=jnp.float32) + b1_ref[l]
        hid = _gelu_exact(hid)
        ffn = jnp.dot(hid.astype(jnp.bfloat16), w2_ref[l],
                      preferred_element_type=jnp.float32) + b2_ref[l]
        return layernorm(ffn + x1, ln2_g_ref[l], ln2_b_ref[l])

    x_final = lax.fori_loop(0, n_layers, layer, x0, unroll=True)

    # Head: dropout = identity (eval) + Linear into a lane-dense (S, 128)
    # block (bf16 MXU, f32 accumulation); wrapper slices back to num_labels.
    logits = jnp.dot(x_final.astype(jnp.bfloat16), cls_w_ref[...],
                     preferred_element_type=jnp.float32) + cls_b_ref[...]
    out_ref[...] = logits.astype(out_ref.dtype)


# --------------------------- parameters & packing -----------------------------

def init_params(key, cfg=CFG):
    std = 0.02
    H, I, L = cfg["hidden"], cfg["intermediate"], cfg["layers"]
    keys = iter(jax.random.split(key, 16 + 8 * L))

    def normal(shape):
        return std * jax.random.normal(next(keys), shape, jnp.float32)

    p = {
        "word_emb": normal((cfg["vocab"], H)),
        "pos_emb": normal((cfg["max_pos"], H)),
        "coord_emb": normal((cfg["coord"], H)),
        "emb_ln_g": jnp.ones((H,), jnp.float32),
        "emb_ln_b": jnp.zeros((H,), jnp.float32),
        "layers": [],
        # classifier head: nn.init.normal_(std=0.02), zero bias (init_weights)
        "cls_w": normal((H, cfg["labels"])),
        "cls_b": jnp.zeros((cfg["labels"],), jnp.float32),
    }
    for _ in range(L):
        p["layers"].append(dict(
            wq=normal((H, H)), bq=jnp.zeros((H,), jnp.float32),
            wk=normal((H, H)), bk=jnp.zeros((H,), jnp.float32),
            wv=normal((H, H)), bv=jnp.zeros((H,), jnp.float32),
            wo=normal((H, H)), bo=jnp.zeros((H,), jnp.float32),
            ln1_g=jnp.ones((H,), jnp.float32), ln1_b=jnp.zeros((H,), jnp.float32),
            w1=normal((H, I)), b1=jnp.zeros((I,), jnp.float32),
            w2=normal((I, H)), b2=jnp.zeros((H,), jnp.float32),
            ln2_g=jnp.ones((H,), jnp.float32), ln2_b=jnp.zeros((H,), jnp.float32),
        ))
    return p


def pack_params(p, cfg=CFG):
    """Stack per-layer weights on a leading [L] axis, fuse QKV, fold the
    attention scale into the Q projection, cast MXU weights to bf16, and pad
    the classifier to a lane-dense 128-wide output."""
    H, I = cfg["hidden"], cfg["intermediate"]
    L = len(p["layers"])
    d = H // cfg["heads"]
    scale = 1.0 / (d ** 0.5)

    def stack(name):
        return jnp.stack([lyr[name] for lyr in p["layers"]])

    wqkv = jnp.concatenate([stack("wq") * scale, stack("wk"), stack("wv")],
                           axis=-1)                               # [L, H, 3H]
    bqkv = jnp.concatenate([stack("bq") * scale, stack("bk"), stack("bv")],
                           axis=-1).reshape(L, 1, 3 * H)          # [L, 1, 3H]

    cls_w = jnp.zeros((H, LANE), jnp.float32).at[:, :cfg["labels"]].set(p["cls_w"])
    cls_b = jnp.zeros((1, LANE), jnp.float32).at[0, :cfg["labels"]].set(p["cls_b"])

    return dict(
        word_emb=p["word_emb"], pos_emb=p["pos_emb"], coord_emb=p["coord_emb"],
        emb_ln_g=p["emb_ln_g"].reshape(1, H), emb_ln_b=p["emb_ln_b"].reshape(1, H),
        wqkv=wqkv.astype(jnp.bfloat16), bqkv=bqkv,
        wo=stack("wo").astype(jnp.bfloat16), bo=stack("bo").reshape(L, 1, H),
        ln1_g=stack("ln1_g").reshape(L, 1, H), ln1_b=stack("ln1_b").reshape(L, 1, H),
        w1=stack("w1").astype(jnp.bfloat16), b1=stack("b1").reshape(L, 1, I),
        w2=stack("w2").astype(jnp.bfloat16), b2=stack("b2").reshape(L, 1, H),
        ln2_g=stack("ln2_g").reshape(L, 1, H), ln2_b=stack("ln2_b").reshape(L, 1, H),
        cls_w=cls_w.astype(jnp.bfloat16), cls_b=cls_b,
    )


# ---------------------------------- forward -----------------------------------

def du_model_for_token_classification(packed, input_ids, bbox,
                                      attention_mask=None, cfg=CFG):
    B, S = input_ids.shape
    H, I, nH = cfg["hidden"], cfg["intermediate"], cfg["heads"]
    L = packed["wqkv"].shape[0]
    assert H % nH == 0 and cfg["labels"] <= LANE

    # --- embeddings (glue: gather lookups stay in XLA) ---
    word = jnp.take(packed["word_emb"], input_ids, axis=0)                  # [B,S,H]
    pos = packed["pos_emb"][:S][None]                                       # [1,S,H]
    coord = jnp.take(packed["coord_emb"],
                     jnp.clip(bbox, 0, cfg["coord"] - 1), axis=0).sum(2)    # [B,S,H]
    emb = (word + pos + coord).astype(jnp.float32).reshape(B * S, H)        # [B*S,H]

    if attention_mask is None:
        attention_mask = jnp.ones((B, S), jnp.float32)
    bias = ((1.0 - attention_mask.astype(jnp.float32)) * -1e9)[:, None, :]  # [B,1,S]

    kernel = functools.partial(_encoder_kernel, num_heads=nH, eps=cfg["eps"])
    out_padded = pl.pallas_call(
        kernel,
        out_shape=jax.ShapeDtypeStruct((B * S, LANE), jnp.float32),
        grid_spec=pltpu.PrefetchScalarGridSpec(
            num_scalar_prefetch=0,
            grid=(B,),
            in_specs=[
                pl.BlockSpec((S, H), lambda b: (b, 0)),                 # emb rows
                pl.BlockSpec((1, 1, S), lambda b: (b, 0, 0)),           # mask bias
                pl.BlockSpec((1, H), lambda b: (0, 0)),                 # emb_ln_g
                pl.BlockSpec((1, H), lambda b: (0, 0)),                 # emb_ln_b
                # Stacked per-layer weights: constant index_map -> resident.
                pl.BlockSpec((L, H, 3 * H), lambda b: (0, 0, 0)),       # wqkv
                pl.BlockSpec((L, 1, 3 * H), lambda b: (0, 0, 0)),       # bqkv
                pl.BlockSpec((L, H, H), lambda b: (0, 0, 0)),           # wo
                pl.BlockSpec((L, 1, H), lambda b: (0, 0, 0)),           # bo
                pl.BlockSpec((L, 1, H), lambda b: (0, 0, 0)),           # ln1_g
                pl.BlockSpec((L, 1, H), lambda b: (0, 0, 0)),           # ln1_b
                pl.BlockSpec((L, H, I), lambda b: (0, 0, 0)),           # w1
                pl.BlockSpec((L, 1, I), lambda b: (0, 0, 0)),           # b1
                pl.BlockSpec((L, I, H), lambda b: (0, 0, 0)),           # w2
                pl.BlockSpec((L, 1, H), lambda b: (0, 0, 0)),           # b2
                pl.BlockSpec((L, 1, H), lambda b: (0, 0, 0)),           # ln2_g
                pl.BlockSpec((L, 1, H), lambda b: (0, 0, 0)),           # ln2_b
                pl.BlockSpec((H, LANE), lambda b: (0, 0)),              # cls_w
                pl.BlockSpec((1, LANE), lambda b: (0, 0)),              # cls_b
            ],
            out_specs=pl.BlockSpec((S, LANE), lambda b: (b, 0)),
        ),
        compiler_params=pltpu.CompilerParams(
            dimension_semantics=("parallel",)),
    )(emb, bias,
      packed["emb_ln_g"], packed["emb_ln_b"],
      packed["wqkv"], packed["bqkv"], packed["wo"], packed["bo"],
      packed["ln1_g"], packed["ln1_b"],
      packed["w1"], packed["b1"], packed["w2"], packed["b2"],
      packed["ln2_g"], packed["ln2_b"],
      packed["cls_w"], packed["cls_b"])

    logits = out_padded.reshape(B, S, LANE)[..., :cfg["labels"]]
    return {"logits": logits, "attentions": None, "hidden_states": None}


# ---------------------------------- main --------------------------------------

if __name__ == "__main__":
    key = jax.random.PRNGKey(0)
    k_param, k_ids, k_bbox = jax.random.split(key, 3)

    B, S = 2, 8
    params = init_params(k_param)
    packed = pack_params(params)

    input_ids = jax.random.randint(k_ids, (B, S), 0, CFG["vocab"], jnp.int32)
    bbox = jax.random.randint(k_bbox, (B, S, 4), 0, CFG["coord"], jnp.int32)
    attention_mask = jnp.ones((B, S), jnp.float32).at[1, -2:].set(0.0)

    fwd = jax.jit(functools.partial(du_model_for_token_classification, cfg=CFG))
    out = fwd(packed, input_ids, bbox, attention_mask)
    logits = jax.block_until_ready(out["logits"])

    assert logits.shape == (B, S, CFG["labels"])
    assert bool(jnp.all(jnp.isfinite(logits)))
    print("KERNEL_OK")
</pallas_src>

<mosaic_0001>
module attributes {stable_mosaic.version = 11 : i64} {
  func.func @_encoder_kernel(%arg0: i32, %arg1: memref<8x128xf32, #tpu.memory_space<vmem>>, %arg2: memref<1x1x8xf32, #tpu.memory_space<vmem>>, %arg3: memref<1x128xf32, #tpu.memory_space<vmem>>, %arg4: memref<1x128xf32, #tpu.memory_space<vmem>>, %arg5: memref<2x128x384xbf16, #tpu.memory_space<vmem>>, %arg6: memref<2x1x384xf32, #tpu.memory_space<vmem>>, %arg7: memref<2x128x128xbf16, #tpu.memory_space<vmem>>, %arg8: memref<2x1x128xf32, #tpu.memory_space<vmem>>, %arg9: memref<2x1x128xf32, #tpu.memory_space<vmem>>, %arg10: memref<2x1x128xf32, #tpu.memory_space<vmem>>, %arg11: memref<2x128x256xbf16, #tpu.memory_space<vmem>>, %arg12: memref<2x1x256xf32, #tpu.memory_space<vmem>>, %arg13: memref<2x256x128xbf16, #tpu.memory_space<vmem>>, %arg14: memref<2x1x128xf32, #tpu.memory_space<vmem>>, %arg15: memref<2x1x128xf32, #tpu.memory_space<vmem>>, %arg16: memref<2x1x128xf32, #tpu.memory_space<vmem>>, %arg17: memref<128x128xbf16, #tpu.memory_space<vmem>>, %arg18: memref<1x128xf32, #tpu.memory_space<vmem>>, %arg19: memref<8x128xf32, #tpu.memory_space<vmem>>) attributes {dimension_semantics = [#tpu.dimension_semantics<parallel>], iteration_bounds = array<i64: 2>, scalar_prefetch = 0 : i64, scratch_operands = 0 : i64, tpu.core_type = #tpu.core_type<tc>, window_params = [{transform_indices = @transform_0, window_bounds = array<i64: 8, 128>}, {transform_indices = @transform_1, window_bounds = array<i64: 1, 1, 8>}, {pipeline_mode = #tpu.pipeline_mode<synchronous>, transform_indices = @transform_2, window_bounds = array<i64: 1, 128>}, {pipeline_mode = #tpu.pipeline_mode<synchronous>, transform_indices = @transform_3, window_bounds = array<i64: 1, 128>}, {pipeline_mode = #tpu.pipeline_mode<synchronous>, transform_indices = @transform_4, window_bounds = array<i64: 2, 128, 384>}, {pipeline_mode = #tpu.pipeline_mode<synchronous>, transform_indices = @transform_5, window_bounds = array<i64: 2, 1, 384>}, {pipeline_mode = #tpu.pipeline_mode<synchronous>, transform_indices = @transform_6, window_bounds = array<i64: 2, 128, 128>}, {pipeline_mode = #tpu.pipeline_mode<synchronous>, transform_indices = @transform_7, window_bounds = array<i64: 2, 1, 128>}, {pipeline_mode = #tpu.pipeline_mode<synchronous>, transform_indices = @transform_8, window_bounds = array<i64: 2, 1, 128>}, {pipeline_mode = #tpu.pipeline_mode<synchronous>, transform_indices = @transform_9, window_bounds = array<i64: 2, 1, 128>}, {pipeline_mode = #tpu.pipeline_mode<synchronous>, transform_indices = @transform_10, window_bounds = array<i64: 2, 128, 256>}, {pipeline_mode = #tpu.pipeline_mode<synchronous>, transform_indices = @transform_11, window_bounds = array<i64: 2, 1, 256>}, {pipeline_mode = #tpu.pipeline_mode<synchronous>, transform_indices = @transform_12, window_bounds = array<i64: 2, 256, 128>}, {pipeline_mode = #tpu.pipeline_mode<synchronous>, transform_indices = @transform_13, window_bounds = array<i64: 2, 1, 128>}, {pipeline_mode = #tpu.pipeline_mode<synchronous>, transform_indices = @transform_14, window_bounds = array<i64: 2, 1, 128>}, {pipeline_mode = #tpu.pipeline_mode<synchronous>, transform_indices = @transform_15, window_bounds = array<i64: 2, 1, 128>}, {pipeline_mode = #tpu.pipeline_mode<synchronous>, transform_indices = @transform_16, window_bounds = array<i64: 128, 128>}, {pipeline_mode = #tpu.pipeline_mode<synchronous>, transform_indices = @transform_17, window_bounds = array<i64: 1, 128>}, {transform_indices = @transform_18, window_bounds = array<i64: 8, 128>}]} {
    %c0 = arith.constant 0 : index
    %c0_0 = arith.constant 0 : index
    %0 = vector.load %arg1[%c0, %c0_0] : memref<8x128xf32, #tpu.memory_space<vmem>>, vector<8x128xf32>
    %c0_1 = arith.constant 0 : index
    %c0_2 = arith.constant 0 : index
    %1 = vector.load %arg3[%c0_1, %c0_2] : memref<1x128xf32, #tpu.memory_space<vmem>>, vector<1x128xf32>
    %c0_3 = arith.constant 0 : index
    %c0_4 = arith.constant 0 : index
    %2 = vector.load %arg4[%c0_3, %c0_4] : memref<1x128xf32, #tpu.memory_space<vmem>>, vector<1x128xf32>
    %cst = arith.constant dense<0.000000e+00> : vector<8xf32>
    %3 = vector.multi_reduction <add>, %0, %cst [1] : vector<8x128xf32> to vector<8xf32>
    %4 = vector.shape_cast %3 : vector<8xf32> to vector<8x1xf32>
    %cst_5 = arith.constant 1.280000e+02 : f32
    %5 = vector.broadcast %cst_5 : f32 to vector<8x1xf32>
    %6 = arith.divf %4, %5 : vector<8x1xf32>
    %7 = vector.broadcast %6 : vector<8x1xf32> to vector<8x128xf32>
    %8 = arith.subf %0, %7 : vector<8x128xf32>
    %9 = arith.mulf %8, %8 : vector<8x128xf32>
    %cst_6 = arith.constant dense<0.000000e+00> : vector<8xf32>
    %10 = vector.multi_reduction <add>, %9, %cst_6 [1] : vector<8x128xf32> to vector<8xf32>
    %11 = vector.shape_cast %10 : vector<8xf32> to vector<8x1xf32>
    %cst_7 = arith.constant 1.280000e+02 : f32
    %12 = vector.broadcast %cst_7 : f32 to vector<8x1xf32>
    %13 = arith.divf %11, %12 : vector<8x1xf32>
    %cst_8 = arith.constant 9.99999996E-13 : f32
    %14 = vector.broadcast %cst_8 : f32 to vector<8x1xf32>
    %15 = arith.addf %13, %14 : vector<8x1xf32>
    %16 = math.rsqrt %15 : vector<8x1xf32>
    %17 = vector.broadcast %16 : vector<8x1xf32> to vector<8x128xf32>
    %18 = arith.mulf %8, %17 : vector<8x128xf32>
    %19 = vector.broadcast %1 : vector<1x128xf32> to vector<8x128xf32>
    %20 = arith.mulf %18, %19 : vector<8x128xf32>
    %21 = vector.broadcast %2 : vector<1x128xf32> to vector<8x128xf32>
    %22 = arith.addf %20, %21 : vector<8x128xf32>
    %c0_9 = arith.constant 0 : index
    %c0_10 = arith.constant 0 : index
    %c0_11 = arith.constant 0 : index
    %23 = vector.load %arg2[%c0_9, %c0_10, %c0_11] : memref<1x1x8xf32, #tpu.memory_space<vmem>>, vector<1x1x8xf32>
    %c0_i32 = arith.constant 0 : i32
    %24 = arith.truncf %22 : vector<8x128xf32> to vector<8x128xbf16>
    %25 = arith.index_cast %c0_i32 : i32 to index
    %c0_12 = arith.constant 0 : index
    %c0_13 = arith.constant 0 : index
    %26 = vector.load %arg5[%25, %c0_12, %c0_13] : memref<2x128x384xbf16, #tpu.memory_space<vmem>>, vector<1x128x384xbf16>
    %27 = vector.shape_cast %26 : vector<1x128x384xbf16> to vector<128x384xbf16>
    %cst_14 = arith.constant dense<0.000000e+00> : vector<8x384xf32>
    %28 = tpu.matmul %24, %27, %cst_14 {dimension_numbers = #tpu.dot_dimension_numbers<[1], [0], [0], [1], [0, 0, 1, 1], [], []>} : vector<8x128xbf16>, vector<128x384xbf16>, vector<8x384xf32> -> vector<8x384xf32>
    %29 = arith.index_cast %c0_i32 : i32 to index
    %c0_15 = arith.constant 0 : index
    %c0_16 = arith.constant 0 : index
    %30 = vector.load %arg6[%29, %c0_15, %c0_16] : memref<2x1x384xf32, #tpu.memory_space<vmem>>, vector<1x1x384xf32>
    %31 = vector.shape_cast %30 : vector<1x1x384xf32> to vector<1x384xf32>
    %32 = vector.broadcast %31 : vector<1x384xf32> to vector<8x384xf32>
    %33 = arith.addf %28, %32 : vector<8x384xf32>
    %34 = vector.extract_strided_slice %33 {offsets = [0, 0], sizes = [8, 128], strides = [1, 1]} : vector<8x384xf32> to vector<8x128xf32>
    %35 = vector.shape_cast %34 : vector<8x128xf32> to vector<8x2x64xf32>
    %36 = tpu.transpose %35, [1, 0, 2] : vector<8x2x64xf32> -> vector<2x8x64xf32>
    %37 = arith.truncf %36 : vector<2x8x64xf32> to vector<2x8x64xbf16>
    %38 = vector.extract_strided_slice %33 {offsets = [0, 128], sizes = [8, 128], strides = [1, 1]} : vector<8x384xf32> to vector<8x128xf32>
    %39 = vector.shape_cast %38 : vector<8x128xf32> to vector<8x2x64xf32>
    %40 = tpu.transpose %39, [1, 0, 2] : vector<8x2x64xf32> -> vector<2x8x64xf32>
    %41 = arith.truncf %40 : vector<2x8x64xf32> to vector<2x8x64xbf16>
    %42 = vector.extract_strided_slice %33 {offsets = [0, 256], sizes = [8, 128], strides = [1, 1]} : vector<8x384xf32> to vector<8x128xf32>
    %43 = vector.shape_cast %42 : vector<8x128xf32> to vector<8x2x64xf32>
    %44 = tpu.transpose %43, [1, 0, 2] : vector<8x2x64xf32> -> vector<2x8x64xf32>
    %45 = arith.truncf %44 : vector<2x8x64xf32> to vector<2x8x64xbf16>
    "tpu.trace_start"() <{level = 10 : i32, message = "hqd,hkd->hqk"}> : () -> ()
    %cst_17 = arith.constant dense<0.000000e+00> : vector<2x8x8xf32>
    %46 = tpu.matmul %37, %41, %cst_17 {dimension_numbers = #tpu.dot_dimension_numbers<[2], [2], [1], [1], [0, 0, 0, 1, 1, 1], [0], [0]>} : vector<2x8x64xbf16>, vector<2x8x64xbf16>, vector<2x8x8xf32> -> vector<2x8x8xf32>
    "tpu.trace_stop"() : () -> ()
    %47 = vector.broadcast %23 : vector<1x1x8xf32> to vector<2x8x8xf32>
    %48 = arith.addf %46, %47 : vector<2x8x8xf32>
    %cst_18 = arith.constant dense<0xFF800000> : vector<2x8xf32>
    %49 = vector.multi_reduction <maximumf>, %48, %cst_18 [2] : vector<2x8x8xf32> to vector<2x8xf32>
    %50 = vector.shape_cast %49 : vector<2x8xf32> to vector<2x8x1xf32>
    %51 = vector.broadcast %50 : vector<2x8x1xf32> to vector<2x8x8xf32>
    %52 = arith.subf %48, %51 : vector<2x8x8xf32>
    %53 = math.exp %52 : vector<2x8x8xf32>
    %cst_19 = arith.constant dense<0.000000e+00> : vector<2x8xf32>
    %54 = vector.multi_reduction <add>, %53, %cst_19 [2] : vector<2x8x8xf32> to vector<2x8xf32>
    %55 = vector.shape_cast %54 : vector<2x8xf32> to vector<2x8x1xf32>
    %56 = tpu.reciprocal %55 {approx = true} : vector<2x8x1xf32> -> vector<2x8x1xf32>
    %57 = vector.broadcast %56 : vector<2x8x1xf32> to vector<2x8x8xf32>
    %58 = arith.mulf %53, %57 : vector<2x8x8xf32>
    %59 = arith.truncf %58 : vector<2x8x8xf32> to vector<2x8x8xbf16>
    "tpu.trace_start"() <{level = 10 : i32, message = "hqk,hkd->hqd"}> : () -> ()
    %cst_20 = arith.constant dense<0.000000e+00> : vector<2x8x64xf32>
    %60 = tpu.matmul %59, %45, %cst_20 {dimension_numbers = #tpu.dot_dimension_numbers<[2], [1], [1], [2], [0, 0, 0, 1, 1, 2], [0], [0]>} : vector<2x8x8xbf16>, vector<2x8x64xbf16>, vector<2x8x64xf32> -> vector<2x8x64xf32>
    "tpu.trace_stop"() : () -> ()
    %61 = tpu.transpose %60, [1, 0, 2] : vector<2x8x64xf32> -> vector<8x2x64xf32>
    %62 = vector.shape_cast %61 : vector<8x2x64xf32> to vector<8x128xf32>
    %63 = arith.truncf %62 : vector<8x128xf32> to vector<8x128xbf16>
    %64 = arith.index_cast %c0_i32 : i32 to index
    %c0_21 = arith.constant 0 : index
    %c0_22 = arith.constant 0 : index
    %65 = vector.load %arg7[%64, %c0_21, %c0_22] : memref<2x128x128xbf16, #tpu.memory_space<vmem>>, vector<1x128x128xbf16>
    %66 = vector.shape_cast %65 : vector<1x128x128xbf16> to vector<128x128xbf16>
    %cst_23 = arith.constant dense<0.000000e+00> : vector<8x128xf32>
    %67 = tpu.matmul %63, %66, %cst_23 {dimension_numbers = #tpu.dot_dimension_numbers<[1], [0], [0], [1], [0, 0, 1, 1], [], []>} : vector<8x128xbf16>, vector<128x128xbf16>, vector<8x128xf32> -> vector<8x128xf32>
    %68 = arith.index_cast %c0_i32 : i32 to index
    %c0_24 = arith.constant 0 : index
    %c0_25 = arith.constant 0 : index
    %69 = vector.load %arg8[%68, %c0_24, %c0_25] : memref<2x1x128xf32, #tpu.memory_space<vmem>>, vector<1x1x128xf32>
    %70 = vector.shape_cast %69 : vector<1x1x128xf32> to vector<1x128xf32>
    %71 = vector.broadcast %70 : vector<1x128xf32> to vector<8x128xf32>
    %72 = arith.addf %67, %71 : vector<8x128xf32>
    %73 = arith.addf %72, %22 : vector<8x128xf32>
    %74 = arith.index_cast %c0_i32 : i32 to index
    %c0_26 = arith.constant 0 : index
    %c0_27 = arith.constant 0 : index
    %75 = vector.load %arg9[%74, %c0_26, %c0_27] : memref<2x1x128xf32, #tpu.memory_space<vmem>>, vector<1x1x128xf32>
    %76 = vector.shape_cast %75 : vector<1x1x128xf32> to vector<1x128xf32>
    %77 = arith.index_cast %c0_i32 : i32 to index
    %c0_28 = arith.constant 0 : index
    %c0_29 = arith.constant 0 : index
    %78 = vector.load %arg10[%77, %c0_28, %c0_29] : memref<2x1x128xf32, #tpu.memory_space<vmem>>, vector<1x1x128xf32>
    %79 = vector.shape_cast %78 : vector<1x1x128xf32> to vector<1x128xf32>
    %cst_30 = arith.constant dense<0.000000e+00> : vector<8xf32>
    %80 = vector.multi_reduction <add>, %73, %cst_30 [1] : vector<8x128xf32> to vector<8xf32>
    %81 = vector.shape_cast %80 : vector<8xf32> to vector<8x1xf32>
    %cst_31 = arith.constant 1.280000e+02 : f32
    %82 = vector.broadcast %cst_31 : f32 to vector<8x1xf32>
    %83 = arith.divf %81, %82 : vector<8x1xf32>
    %84 = vector.broadcast %83 : vector<8x1xf32> to vector<8x128xf32>
    %85 = arith.subf %73, %84 : vector<8x128xf32>
    %86 = arith.mulf %85, %85 : vector<8x128xf32>
    %cst_32 = arith.constant dense<0.000000e+00> : vector<8xf32>
    %87 = vector.multi_reduction <add>, %86, %cst_32 [1] : vector<8x128xf32> to vector<8xf32>
    %88 = vector.shape_cast %87 : vector<8xf32> to vector<8x1xf32>
    %cst_33 = arith.constant 1.280000e+02 : f32
    %89 = vector.broadcast %cst_33 : f32 to vector<8x1xf32>
    %90 = arith.divf %88, %89 : vector<8x1xf32>
    %cst_34 = arith.constant 9.99999996E-13 : f32
    %91 = vector.broadcast %cst_34 : f32 to vector<8x1xf32>
    %92 = arith.addf %90, %91 : vector<8x1xf32>
    %93 = math.rsqrt %92 : vector<8x1xf32>
    %94 = vector.broadcast %93 : vector<8x1xf32> to vector<8x128xf32>
    %95 = arith.mulf %85, %94 : vector<8x128xf32>
    %96 = vector.broadcast %76 : vector<1x128xf32> to vector<8x128xf32>
    %97 = arith.mulf %95, %96 : vector<8x128xf32>
    %98 = vector.broadcast %79 : vector<1x128xf32> to vector<8x128xf32>
    %99 = arith.addf %97, %98 : vector<8x128xf32>
    %100 = arith.truncf %99 : vector<8x128xf32> to vector<8x128xbf16>
    %101 = arith.index_cast %c0_i32 : i32 to index
    %c0_35 = arith.constant 0 : index
    %c0_36 = arith.constant 0 : index
    %102 = vector.load %arg11[%101, %c0_35, %c0_36] : memref<2x128x256xbf16, #tpu.memory_space<vmem>>, vector<1x128x256xbf16>
    %103 = vector.shape_cast %102 : vector<1x128x256xbf16> to vector<128x256xbf16>
    %cst_37 = arith.constant dense<0.000000e+00> : vector<8x256xf32>
    %104 = tpu.matmul %100, %103, %cst_37 {dimension_numbers = #tpu.dot_dimension_numbers<[1], [0], [0], [1], [0, 0, 1, 1], [], []>} : vector<8x128xbf16>, vector<128x256xbf16>, vector<8x256xf32> -> vector<8x256xf32>
    %105 = arith.index_cast %c0_i32 : i32 to index
    %c0_38 = arith.constant 0 : index
    %c0_39 = arith.constant 0 : index
    %106 = vector.load %arg12[%105, %c0_38, %c0_39] : memref<2x1x256xf32, #tpu.memory_space<vmem>>, vector<1x1x256xf32>
    %107 = vector.shape_cast %106 : vector<1x1x256xf32> to vector<1x256xf32>
    %108 = vector.broadcast %107 : vector<1x256xf32> to vector<8x256xf32>
    %109 = arith.addf %104, %108 : vector<8x256xf32>
    %cst_40 = arith.constant 5.000000e-01 : f32
    %110 = vector.broadcast %cst_40 : f32 to vector<8x256xf32>
    %111 = arith.mulf %110, %109 : vector<8x256xf32>
    %cst_41 = arith.constant 0.707106769 : f32
    %112 = vector.broadcast %cst_41 : f32 to vector<8x256xf32>
    %113 = arith.mulf %109, %112 : vector<8x256xf32>
    %114 = math.absf %113 : vector<8x256xf32>
    %cst_42 = arith.constant 0.327591091 : f32
    %115 = vector.broadcast %cst_42 : f32 to vector<8x256xf32>
    %116 = arith.mulf %115, %114 : vector<8x256xf32>
    %cst_43 = arith.constant 1.000000e+00 : f32
    %117 = vector.broadcast %cst_43 : f32 to vector<8x256xf32>
    %118 = arith.addf %117, %116 : vector<8x256xf32>
    %cst_44 = arith.constant 1.000000e+00 : f32
    %119 = vector.broadcast %cst_44 : f32 to vector<8x256xf32>
    %120 = arith.divf %119, %118 : vector<8x256xf32>
    %cst_45 = arith.constant 1.06140542 : f32
    %121 = vector.broadcast %cst_45 : f32 to vector<8x256xf32>
    %122 = arith.mulf %121, %120 : vector<8x256xf32>
    %cst_46 = arith.constant -1.45315206 : f32
    %123 = vector.broadcast %cst_46 : f32 to vector<8x256xf32>
    %124 = arith.addf %122, %123 : vector<8x256xf32>
    %125 = arith.mulf %124, %120 : vector<8x256xf32>
    %cst_47 = arith.constant 1.42141378 : f32
    %126 = vector.broadcast %cst_47 : f32 to vector<8x256xf32>
    %127 = arith.addf %125, %126 : vector<8x256xf32>
    %128 = arith.mulf %127, %120 : vector<8x256xf32>
    %cst_48 = arith.constant -0.284496725 : f32
    %129 = vector.broadcast %cst_48 : f32 to vector<8x256xf32>
    %130 = arith.addf %128, %129 : vector<8x256xf32>
    %131 = arith.mulf %130, %120 : vector<8x256xf32>
    %cst_49 = arith.constant 0.254829586 : f32
    %132 = vector.broadcast %cst_49 : f32 to vector<8x256xf32>
    %133 = arith.addf %131, %132 : vector<8x256xf32>
    %134 = arith.mulf %133, %120 : vector<8x256xf32>
    %cst_50 = arith.constant 0.000000e+00 : f32
    %135 = vector.broadcast %cst_50 : f32 to vector<8x256xf32>
    %136 = arith.subf %135, %114 : vector<8x256xf32>
    %137 = arith.mulf %136, %114 : vector<8x256xf32>
    %138 = math.exp %137 : vector<8x256xf32>
    %139 = arith.mulf %134, %138 : vector<8x256xf32>
    %cst_51 = arith.constant 1.000000e+00 : f32
    %140 = vector.broadcast %cst_51 : f32 to vector<8x256xf32>
    %141 = arith.subf %140, %139 : vector<8x256xf32>
    %cst_52 = arith.constant 0.000000e+00 : f32
    %142 = vector.broadcast %cst_52 : f32 to vector<8x256xf32>
    %143 = arith.cmpf olt, %113, %142 : vector<8x256xf32>
    %cst_53 = arith.constant 0.000000e+00 : f32
    %144 = vector.broadcast %cst_53 : f32 to vector<8x256xf32>
    %145 = arith.subf %144, %141 : vector<8x256xf32>
    %146 = arith.select %143, %145, %141 : vector<8x256xi1>, vector<8x256xf32>
    %cst_54 = arith.constant 1.000000e+00 : f32
    %147 = vector.broadcast %cst_54 : f32 to vector<8x256xf32>
    %148 = arith.addf %147, %146 : vector<8x256xf32>
    %149 = arith.mulf %111, %148 : vector<8x256xf32>
    %150 = arith.truncf %149 : vector<8x256xf32> to vector<8x256xbf16>
    %151 = arith.index_cast %c0_i32 : i32 to index
    %c0_55 = arith.constant 0 : index
    %c0_56 = arith.constant 0 : index
    %152 = vector.load %arg13[%151, %c0_55, %c0_56] : memref<2x256x128xbf16, #tpu.memory_space<vmem>>, vector<1x256x128xbf16>
    %153 = vector.shape_cast %152 : vector<1x256x128xbf16> to vector<256x128xbf16>
    %cst_57 = arith.constant dense<0.000000e+00> : vector<8x128xf32>
    %154 = tpu.matmul %150, %153, %cst_57 {dimension_numbers = #tpu.dot_dimension_numbers<[1], [0], [0], [1], [0, 0, 1, 1], [], []>} : vector<8x256xbf16>, vector<256x128xbf16>, vector<8x128xf32> -> vector<8x128xf32>
    %155 = arith.index_cast %c0_i32 : i32 to index
    %c0_58 = arith.constant 0 : index
    %c0_59 = arith.constant 0 : index
    %156 = vector.load %arg14[%155, %c0_58, %c0_59] : memref<2x1x128xf32, #tpu.memory_space<vmem>>, vector<1x1x128xf32>
    %157 = vector.shape_cast %156 : vector<1x1x128xf32> to vector<1x128xf32>
    %158 = vector.broadcast %157 : vector<1x128xf32> to vector<8x128xf32>
    %159 = arith.addf %154, %158 : vector<8x128xf32>
    %160 = arith.addf %159, %99 : vector<8x128xf32>
    %161 = arith.index_cast %c0_i32 : i32 to index
    %c0_60 = arith.constant 0 : index
    %c0_61 = arith.constant 0 : index
    %162 = vector.load %arg15[%161, %c0_60, %c0_61] : memref<2x1x128xf32, #tpu.memory_space<vmem>>, vector<1x1x128xf32>
    %163 = vector.shape_cast %162 : vector<1x1x128xf32> to vector<1x128xf32>
    %164 = arith.index_cast %c0_i32 : i32 to index
    %c0_62 = arith.constant 0 : index
    %c0_63 = arith.constant 0 : index
    %165 = vector.load %arg16[%164, %c0_62, %c0_63] : memref<2x1x128xf32, #tpu.memory_space<vmem>>, vector<1x1x128xf32>
    %166 = vector.shape_cast %165 : vector<1x1x128xf32> to vector<1x128xf32>
    %cst_64 = arith.constant dense<0.000000e+00> : vector<8xf32>
    %167 = vector.multi_reduction <add>, %160, %cst_64 [1] : vector<8x128xf32> to vector<8xf32>
    %168 = vector.shape_cast %167 : vector<8xf32> to vector<8x1xf32>
    %cst_65 = arith.constant 1.280000e+02 : f32
    %169 = vector.broadcast %cst_65 : f32 to vector<8x1xf32>
    %170 = arith.divf %168, %169 : vector<8x1xf32>
    %171 = vector.broadcast %170 : vector<8x1xf32> to vector<8x128xf32>
    %172 = arith.subf %160, %171 : vector<8x128xf32>
    %173 = arith.mulf %172, %172 : vector<8x128xf32>
    %cst_66 = arith.constant dense<0.000000e+00> : vector<8xf32>
    %174 = vector.multi_reduction <add>, %173, %cst_66 [1] : vector<8x128xf32> to vector<8xf32>
    %175 = vector.shape_cast %174 : vector<8xf32> to vector<8x1xf32>
    %cst_67 = arith.constant 1.280000e+02 : f32
    %176 = vector.broadcast %cst_67 : f32 to vector<8x1xf32>
    %177 = arith.divf %175, %176 : vector<8x1xf32>
    %cst_68 = arith.constant 9.99999996E-13 : f32
    %178 = vector.broadcast %cst_68 : f32 to vector<8x1xf32>
    %179 = arith.addf %177, %178 : vector<8x1xf32>
    %180 = math.rsqrt %179 : vector<8x1xf32>
    %181 = vector.broadcast %180 : vector<8x1xf32> to vector<8x128xf32>
    %182 = arith.mulf %172, %181 : vector<8x128xf32>
    %183 = vector.broadcast %163 : vector<1x128xf32> to vector<8x128xf32>
    %184 = arith.mulf %182, %183 : vector<8x128xf32>
    %185 = vector.broadcast %166 : vector<1x128xf32> to vector<8x128xf32>
    %186 = arith.addf %184, %185 : vector<8x128xf32>
    %c1_i32 = arith.constant 1 : i32
    %187 = arith.truncf %186 : vector<8x128xf32> to vector<8x128xbf16>
    %188 = arith.index_cast %c1_i32 : i32 to index
    %c0_69 = arith.constant 0 : index
    %c0_70 = arith.constant 0 : index
    %189 = vector.load %arg5[%188, %c0_69, %c0_70] : memref<2x128x384xbf16, #tpu.memory_space<vmem>>, vector<1x128x384xbf16>
    %190 = vector.shape_cast %189 : vector<1x128x384xbf16> to vector<128x384xbf16>
    %cst_71 = arith.constant dense<0.000000e+00> : vector<8x384xf32>
    %191 = tpu.matmul %187, %190, %cst_71 {dimension_numbers = #tpu.dot_dimension_numbers<[1], [0], [0], [1], [0, 0, 1, 1], [], []>} : vector<8x128xbf16>, vector<128x384xbf16>, vector<8x384xf32> -> vector<8x384xf32>
    %192 = arith.index_cast %c1_i32 : i32 to index
    %c0_72 = arith.constant 0 : index
    %c0_73 = arith.constant 0 : index
    %193 = vector.load %arg6[%192, %c0_72, %c0_73] : memref<2x1x384xf32, #tpu.memory_space<vmem>>, vector<1x1x384xf32>
    %194 = vector.shape_cast %193 : vector<1x1x384xf32> to vector<1x384xf32>
    %195 = vector.broadcast %194 : vector<1x384xf32> to vector<8x384xf32>
    %196 = arith.addf %191, %195 : vector<8x384xf32>
    %197 = vector.extract_strided_slice %196 {offsets = [0, 0], sizes = [8, 128], strides = [1, 1]} : vector<8x384xf32> to vector<8x128xf32>
    %198 = vector.shape_cast %197 : vector<8x128xf32> to vector<8x2x64xf32>
    %199 = tpu.transpose %198, [1, 0, 2] : vector<8x2x64xf32> -> vector<2x8x64xf32>
    %200 = arith.truncf %199 : vector<2x8x64xf32> to vector<2x8x64xbf16>
    %201 = vector.extract_strided_slice %196 {offsets = [0, 128], sizes = [8, 128], strides = [1, 1]} : vector<8x384xf32> to vector<8x128xf32>
    %202 = vector.shape_cast %201 : vector<8x128xf32> to vector<8x2x64xf32>
    %203 = tpu.transpose %202, [1, 0, 2] : vector<8x2x64xf32> -> vector<2x8x64xf32>
    %204 = arith.truncf %203 : vector<2x8x64xf32> to vector<2x8x64xbf16>
    %205 = vector.extract_strided_slice %196 {offsets = [0, 256], sizes = [8, 128], strides = [1, 1]} : vector<8x384xf32> to vector<8x128xf32>
    %206 = vector.shape_cast %205 : vector<8x128xf32> to vector<8x2x64xf32>
    %207 = tpu.transpose %206, [1, 0, 2] : vector<8x2x64xf32> -> vector<2x8x64xf32>
    %208 = arith.truncf %207 : vector<2x8x64xf32> to vector<2x8x64xbf16>
    "tpu.trace_start"() <{level = 10 : i32, message = "hqd,hkd->hqk"}> : () -> ()
    %cst_74 = arith.constant dense<0.000000e+00> : vector<2x8x8xf32>
    %209 = tpu.matmul %200, %204, %cst_74 {dimension_numbers = #tpu.dot_dimension_numbers<[2], [2], [1], [1], [0, 0, 0, 1, 1, 1], [0], [0]>} : vector<2x8x64xbf16>, vector<2x8x64xbf16>, vector<2x8x8xf32> -> vector<2x8x8xf32>
    "tpu.trace_stop"() : () -> ()
    %210 = vector.broadcast %23 : vector<1x1x8xf32> to vector<2x8x8xf32>
    %211 = arith.addf %209, %210 : vector<2x8x8xf32>
    %cst_75 = arith.constant dense<0xFF800000> : vector<2x8xf32>
    %212 = vector.multi_reduction <maximumf>, %211, %cst_75 [2] : vector<2x8x8xf32> to vector<2x8xf32>
    %213 = vector.shape_cast %212 : vector<2x8xf32> to vector<2x8x1xf32>
    %214 = vector.broadcast %213 : vector<2x8x1xf32> to vector<2x8x8xf32>
    %215 = arith.subf %211, %214 : vector<2x8x8xf32>
    %216 = math.exp %215 : vector<2x8x8xf32>
    %cst_76 = arith.constant dense<0.000000e+00> : vector<2x8xf32>
    %217 = vector.multi_reduction <add>, %216, %cst_76 [2] : vector<2x8x8xf32> to vector<2x8xf32>
    %218 = vector.shape_cast %217 : vector<2x8xf32> to vector<2x8x1xf32>
    %219 = tpu.reciprocal %218 {approx = true} : vector<2x8x1xf32> -> vector<2x8x1xf32>
    %220 = vector.broadcast %219 : vector<2x8x1xf32> to vector<2x8x8xf32>
    %221 = arith.mulf %216, %220 : vector<2x8x8xf32>
    %222 = arith.truncf %221 : vector<2x8x8xf32> to vector<2x8x8xbf16>
    "tpu.trace_start"() <{level = 10 : i32, message = "hqk,hkd->hqd"}> : () -> ()
    %cst_77 = arith.constant dense<0.000000e+00> : vector<2x8x64xf32>
    %223 = tpu.matmul %222, %208, %cst_77 {dimension_numbers = #tpu.dot_dimension_numbers<[2], [1], [1], [2], [0, 0, 0, 1, 1, 2], [0], [0]>} : vector<2x8x8xbf16>, vector<2x8x64xbf16>, vector<2x8x64xf32> -> vector<2x8x64xf32>
    "tpu.trace_stop"() : () -> ()
    %224 = tpu.transpose %223, [1, 0, 2] : vector<2x8x64xf32> -> vector<8x2x64xf32>
    %225 = vector.shape_cast %224 : vector<8x2x64xf32> to vector<8x128xf32>
    %226 = arith.truncf %225 : vector<8x128xf32> to vector<8x128xbf16>
    %227 = arith.index_cast %c1_i32 : i32 to index
    %c0_78 = arith.constant 0 : index
    %c0_79 = arith.constant 0 : index
    %228 = vector.load %arg7[%227, %c0_78, %c0_79] : memref<2x128x128xbf16, #tpu.memory_space<vmem>>, vector<1x128x128xbf16>
    %229 = vector.shape_cast %228 : vector<1x128x128xbf16> to vector<128x128xbf16>
    %cst_80 = arith.constant dense<0.000000e+00> : vector<8x128xf32>
    %230 = tpu.matmul %226, %229, %cst_80 {dimension_numbers = #tpu.dot_dimension_numbers<[1], [0], [0], [1], [0, 0, 1, 1], [], []>} : vector<8x128xbf16>, vector<128x128xbf16>, vector<8x128xf32> -> vector<8x128xf32>
    %231 = arith.index_cast %c1_i32 : i32 to index
    %c0_81 = arith.constant 0 : index
    %c0_82 = arith.constant 0 : index
    %232 = vector.load %arg8[%231, %c0_81, %c0_82] : memref<2x1x128xf32, #tpu.memory_space<vmem>>, vector<1x1x128xf32>
    %233 = vector.shape_cast %232 : vector<1x1x128xf32> to vector<1x128xf32>
    %234 = vector.broadcast %233 : vector<1x128xf32> to vector<8x128xf32>
    %235 = arith.addf %230, %234 : vector<8x128xf32>
    %236 = arith.addf %235, %186 : vector<8x128xf32>
    %237 = arith.index_cast %c1_i32 : i32 to index
    %c0_83 = arith.constant 0 : index
    %c0_84 = arith.constant 0 : index
    %238 = vector.load %arg9[%237, %c0_83, %c0_84] : memref<2x1x128xf32, #tpu.memory_space<vmem>>, vector<1x1x128xf32>
    %239 = vector.shape_cast %238 : vector<1x1x128xf32> to vector<1x128xf32>
    %240 = arith.index_cast %c1_i32 : i32 to index
    %c0_85 = arith.constant 0 : index
    %c0_86 = arith.constant 0 : index
    %241 = vector.load %arg10[%240, %c0_85, %c0_86] : memref<2x1x128xf32, #tpu.memory_space<vmem>>, vector<1x1x128xf32>
    %242 = vector.shape_cast %241 : vector<1x1x128xf32> to vector<1x128xf32>
    %cst_87 = arith.constant dense<0.000000e+00> : vector<8xf32>
    %243 = vector.multi_reduction <add>, %236, %cst_87 [1] : vector<8x128xf32> to vector<8xf32>
    %244 = vector.shape_cast %243 : vector<8xf32> to vector<8x1xf32>
    %cst_88 = arith.constant 1.280000e+02 : f32
    %245 = vector.broadcast %cst_88 : f32 to vector<8x1xf32>
    %246 = arith.divf %244, %245 : vector<8x1xf32>
    %247 = vector.broadcast %246 : vector<8x1xf32> to vector<8x128xf32>
    %248 = arith.subf %236, %247 : vector<8x128xf32>
    %249 = arith.mulf %248, %248 : vector<8x128xf32>
    %cst_89 = arith.constant dense<0.000000e+00> : vector<8xf32>
    %250 = vector.multi_reduction <add>, %249, %cst_89 [1] : vector<8x128xf32> to vector<8xf32>
    %251 = vector.shape_cast %250 : vector<8xf32> to vector<8x1xf32>
    %cst_90 = arith.constant 1.280000e+02 : f32
    %252 = vector.broadcast %cst_90 : f32 to vector<8x1xf32>
    %253 = arith.divf %251, %252 : vector<8x1xf32>
    %cst_91 = arith.constant 9.99999996E-13 : f32
    %254 = vector.broadcast %cst_91 : f32 to vector<8x1xf32>
    %255 = arith.addf %253, %254 : vector<8x1xf32>
    %256 = math.rsqrt %255 : vector<8x1xf32>
    %257 = vector.broadcast %256 : vector<8x1xf32> to vector<8x128xf32>
    %258 = arith.mulf %248, %257 : vector<8x128xf32>
    %259 = vector.broadcast %239 : vector<1x128xf32> to vector<8x128xf32>
    %260 = arith.mulf %258, %259 : vector<8x128xf32>
    %261 = vector.broadcast %242 : vector<1x128xf32> to vector<8x128xf32>
    %262 = arith.addf %260, %261 : vector<8x128xf32>
    %263 = arith.truncf %262 : vector<8x128xf32> to vector<8x128xbf16>
    %264 = arith.index_cast %c1_i32 : i32 to index
    %c0_92 = arith.constant 0 : index
    %c0_93 = arith.constant 0 : index
    %265 = vector.load %arg11[%264, %c0_92, %c0_93] : memref<2x128x256xbf16, #tpu.memory_space<vmem>>, vector<1x128x256xbf16>
    %266 = vector.shape_cast %265 : vector<1x128x256xbf16> to vector<128x256xbf16>
    %cst_94 = arith.constant dense<0.000000e+00> : vector<8x256xf32>
    %267 = tpu.matmul %263, %266, %cst_94 {dimension_numbers = #tpu.dot_dimension_numbers<[1], [0], [0], [1], [0, 0, 1, 1], [], []>} : vector<8x128xbf16>, vector<128x256xbf16>, vector<8x256xf32> -> vector<8x256xf32>
    %268 = arith.index_cast %c1_i32 : i32 to index
    %c0_95 = arith.constant 0 : index
    %c0_96 = arith.constant 0 : index
    %269 = vector.load %arg12[%268, %c0_95, %c0_96] : memref<2x1x256xf32, #tpu.memory_space<vmem>>, vector<1x1x256xf32>
    %270 = vector.shape_cast %269 : vector<1x1x256xf32> to vector<1x256xf32>
    %271 = vector.broadcast %270 : vector<1x256xf32> to vector<8x256xf32>
    %272 = arith.addf %267, %271 : vector<8x256xf32>
    %cst_97 = arith.constant 5.000000e-01 : f32
    %273 = vector.broadcast %cst_97 : f32 to vector<8x256xf32>
    %274 = arith.mulf %273, %272 : vector<8x256xf32>
    %cst_98 = arith.constant 0.707106769 : f32
    %275 = vector.broadcast %cst_98 : f32 to vector<8x256xf32>
    %276 = arith.mulf %272, %275 : vector<8x256xf32>
    %277 = math.absf %276 : vector<8x256xf32>
    %cst_99 = arith.constant 0.327591091 : f32
    %278 = vector.broadcast %cst_99 : f32 to vector<8x256xf32>
    %279 = arith.mulf %278, %277 : vector<8x256xf32>
    %cst_100 = arith.constant 1.000000e+00 : f32
    %280 = vector.broadcast %cst_100 : f32 to vector<8x256xf32>
    %281 = arith.addf %280, %279 : vector<8x256xf32>
    %cst_101 = arith.constant 1.000000e+00 : f32
    %282 = vector.broadcast %cst_101 : f32 to vector<8x256xf32>
    %283 = arith.divf %282, %281 : vector<8x256xf32>
    %cst_102 = arith.constant 1.06140542 : f32
    %284 = vector.broadcast %cst_102 : f32 to vector<8x256xf32>
    %285 = arith.mulf %284, %283 : vector<8x256xf32>
    %cst_103 = arith.constant -1.45315206 : f32
    %286 = vector.broadcast %cst_103 : f32 to vector<8x256xf32>
    %287 = arith.addf %285, %286 : vector<8x256xf32>
    %288 = arith.mulf %287, %283 : vector<8x256xf32>
    %cst_104 = arith.constant 1.42141378 : f32
    %289 = vector.broadcast %cst_104 : f32 to vector<8x256xf32>
    %290 = arith.addf %288, %289 : vector<8x256xf32>
    %291 = arith.mulf %290, %283 : vector<8x256xf32>
    %cst_105 = arith.constant -0.284496725 : f32
    %292 = vector.broadcast %cst_105 : f32 to vector<8x256xf32>
    %293 = arith.addf %291, %292 : vector<8x256xf32>
    %294 = arith.mulf %293, %283 : vector<8x256xf32>
    %cst_106 = arith.constant 0.254829586 : f32
    %295 = vector.broadcast %cst_106 : f32 to vector<8x256xf32>
    %296 = arith.addf %294, %295 : vector<8x256xf32>
    %297 = arith.mulf %296, %283 : vector<8x256xf32>
    %cst_107 = arith.constant 0.000000e+00 : f32
    %298 = vector.broadcast %cst_107 : f32 to vector<8x256xf32>
    %299 = arith.subf %298, %277 : vector<8x256xf32>
    %300 = arith.mulf %299, %277 : vector<8x256xf32>
    %301 = math.exp %300 : vector<8x256xf32>
    %302 = arith.mulf %297, %301 : vector<8x256xf32>
    %cst_108 = arith.constant 1.000000e+00 : f32
    %303 = vector.broadcast %cst_108 : f32 to vector<8x256xf32>
    %304 = arith.subf %303, %302 : vector<8x256xf32>
    %cst_109 = arith.constant 0.000000e+00 : f32
    %305 = vector.broadcast %cst_109 : f32 to vector<8x256xf32>
    %306 = arith.cmpf olt, %276, %305 : vector<8x256xf32>
    %cst_110 = arith.constant 0.000000e+00 : f32
    %307 = vector.broadcast %cst_110 : f32 to vector<8x256xf32>
    %308 = arith.subf %307, %304 : vector<8x256xf32>
    %309 = arith.select %306, %308, %304 : vector<8x256xi1>, vector<8x256xf32>
    %cst_111 = arith.constant 1.000000e+00 : f32
    %310 = vector.broadcast %cst_111 : f32 to vector<8x256xf32>
    %311 = arith.addf %310, %309 : vector<8x256xf32>
    %312 = arith.mulf %274, %311 : vector<8x256xf32>
    %313 = arith.truncf %312 : vector<8x256xf32> to vector<8x256xbf16>
    %314 = arith.index_cast %c1_i32 : i32 to index
    %c0_112 = arith.constant 0 : index
    %c0_113 = arith.constant 0 : index
    %315 = vector.load %arg13[%314, %c0_112, %c0_113] : memref<2x256x128xbf16, #tpu.memory_space<vmem>>, vector<1x256x128xbf16>
    %316 = vector.shape_cast %315 : vector<1x256x128xbf16> to vector<256x128xbf16>
    %cst_114 = arith.constant dense<0.000000e+00> : vector<8x128xf32>
    %317 = tpu.matmul %313, %316, %cst_114 {dimension_numbers = #tpu.dot_dimension_numbers<[1], [0], [0], [1], [0, 0, 1, 1], [], []>} : vector<8x256xbf16>, vector<256x128xbf16>, vector<8x128xf32> -> vector<8x128xf32>
    %318 = arith.index_cast %c1_i32 : i32 to index
    %c0_115 = arith.constant 0 : index
    %c0_116 = arith.constant 0 : index
    %319 = vector.load %arg14[%318, %c0_115, %c0_116] : memref<2x1x128xf32, #tpu.memory_space<vmem>>, vector<1x1x128xf32>
    %320 = vector.shape_cast %319 : vector<1x1x128xf32> to vector<1x128xf32>
    %321 = vector.broadcast %320 : vector<1x128xf32> to vector<8x128xf32>
    %322 = arith.addf %317, %321 : vector<8x128xf32>
    %323 = arith.addf %322, %262 : vector<8x128xf32>
    %324 = arith.index_cast %c1_i32 : i32 to index
    %c0_117 = arith.constant 0 : index
    %c0_118 = arith.constant 0 : index
    %325 = vector.load %arg15[%324, %c0_117, %c0_118] : memref<2x1x128xf32, #tpu.memory_space<vmem>>, vector<1x1x128xf32>
    %326 = vector.shape_cast %325 : vector<1x1x128xf32> to vector<1x128xf32>
    %327 = arith.index_cast %c1_i32 : i32 to index
    %c0_119 = arith.constant 0 : index
    %c0_120 = arith.constant 0 : index
    %328 = vector.load %arg16[%327, %c0_119, %c0_120] : memref<2x1x128xf32, #tpu.memory_space<vmem>>, vector<1x1x128xf32>
    %329 = vector.shape_cast %328 : vector<1x1x128xf32> to vector<1x128xf32>
    %cst_121 = arith.constant dense<0.000000e+00> : vector<8xf32>
    %330 = vector.multi_reduction <add>, %323, %cst_121 [1] : vector<8x128xf32> to vector<8xf32>
    %331 = vector.shape_cast %330 : vector<8xf32> to vector<8x1xf32>
    %cst_122 = arith.constant 1.280000e+02 : f32
    %332 = vector.broadcast %cst_122 : f32 to vector<8x1xf32>
    %333 = arith.divf %331, %332 : vector<8x1xf32>
    %334 = vector.broadcast %333 : vector<8x1xf32> to vector<8x128xf32>
    %335 = arith.subf %323, %334 : vector<8x128xf32>
    %336 = arith.mulf %335, %335 : vector<8x128xf32>
    %cst_123 = arith.constant dense<0.000000e+00> : vector<8xf32>
    %337 = vector.multi_reduction <add>, %336, %cst_123 [1] : vector<8x128xf32> to vector<8xf32>
    %338 = vector.shape_cast %337 : vector<8xf32> to vector<8x1xf32>
    %cst_124 = arith.constant 1.280000e+02 : f32
    %339 = vector.broadcast %cst_124 : f32 to vector<8x1xf32>
    %340 = arith.divf %338, %339 : vector<8x1xf32>
    %cst_125 = arith.constant 9.99999996E-13 : f32
    %341 = vector.broadcast %cst_125 : f32 to vector<8x1xf32>
    %342 = arith.addf %340, %341 : vector<8x1xf32>
    %343 = math.rsqrt %342 : vector<8x1xf32>
    %344 = vector.broadcast %343 : vector<8x1xf32> to vector<8x128xf32>
    %345 = arith.mulf %335, %344 : vector<8x128xf32>
    %346 = vector.broadcast %326 : vector<1x128xf32> to vector<8x128xf32>
    %347 = arith.mulf %345, %346 : vector<8x128xf32>
    %348 = vector.broadcast %329 : vector<1x128xf32> to vector<8x128xf32>
    %349 = arith.addf %347, %348 : vector<8x128xf32>
    %c2_i32 = arith.constant 2 : i32
    %350 = arith.truncf %349 : vector<8x128xf32> to vector<8x128xbf16>
    %c0_126 = arith.constant 0 : index
    %c0_127 = arith.constant 0 : index
    %351 = vector.load %arg17[%c0_126, %c0_127] : memref<128x128xbf16, #tpu.memory_space<vmem>>, vector<128x128xbf16>
    %cst_128 = arith.constant dense<0.000000e+00> : vector<8x128xf32>
    %352 = tpu.matmul %350, %351, %cst_128 {dimension_numbers = #tpu.dot_dimension_numbers<[1], [0], [0], [1], [0, 0, 1, 1], [], []>} : vector<8x128xbf16>, vector<128x128xbf16>, vector<8x128xf32> -> vector<8x128xf32>
    %c0_129 = arith.constant 0 : index
    %c0_130 = arith.constant 0 : index
    %353 = vector.load %arg18[%c0_129, %c0_130] : memref<1x128xf32, #tpu.memory_space<vmem>>, vector<1x128xf32>
    %354 = vector.broadcast %353 : vector<1x128xf32> to vector<8x128xf32>
    %355 = arith.addf %352, %354 : vector<8x128xf32>
    %c0_131 = arith.constant 0 : index
    %c0_132 = arith.constant 0 : index
    %356 = vector.load %arg19[%c0_131, %c0_132] : memref<8x128xf32, #tpu.memory_space<vmem>>, vector<8x128xf32>
    tpu.vector_store %arg19[%c0_131, %c0_132], %355 {strides = array<i32>} : memref<8x128xf32, #tpu.memory_space<vmem>>, vector<8x128xf32>,
    return
  }
  func.func @transform_0(%arg0: i32) -> (i32, i32) {
    %c0_i32 = arith.constant 0 : i32
    %c0_i32_0 = arith.constant 0 : i32
    return %arg0, %c0_i32 : i32, i32
  }
  func.func @transform_1(%arg0: i32) -> (i32, i32, i32) {
    %c0_i32 = arith.constant 0 : i32
    %c0_i32_0 = arith.constant 0 : i32
    %c0_i32_1 = arith.constant 0 : i32
    return %arg0, %c0_i32, %c0_i32_0 : i32, i32, i32
  }
  func.func @transform_2(%arg0: i32) -> (i32, i32) {
    %c0_i32 = arith.constant 0 : i32
    %c0_i32_0 = arith.constant 0 : i32
    %c0_i32_1 = arith.constant 0 : i32
    return %c0_i32, %c0_i32_0 : i32, i32
  }
  func.func @transform_3(%arg0: i32) -> (i32, i32) {
    %c0_i32 = arith.constant 0 : i32
    %c0_i32_0 = arith.constant 0 : i32
    %c0_i32_1 = arith.constant 0 : i32
    return %c0_i32, %c0_i32_0 : i32, i32
  }
  func.func @transform_4(%arg0: i32) -> (i32, i32, i32) {
    %c0_i32 = arith.constant 0 : i32
    %c0_i32_0 = arith.constant 0 : i32
    %c0_i32_1 = arith.constant 0 : i32
    %c0_i32_2 = arith.constant 0 : i32
    return %c0_i32, %c0_i32_0, %c0_i32_1 : i32, i32, i32
  }
  func.func @transform_5(%arg0: i32) -> (i32, i32, i32) {
    %c0_i32 = arith.constant 0 : i32
    %c0_i32_0 = arith.constant 0 : i32
    %c0_i32_1 = arith.constant 0 : i32
    %c0_i32_2 = arith.constant 0 : i32
    return %c0_i32, %c0_i32_0, %c0_i32_1 : i32, i32, i32
  }
  func.func @transform_6(%arg0: i32) -> (i32, i32, i32) {
    %c0_i32 = arith.constant 0 : i32
    %c0_i32_0 = arith.constant 0 : i32
    %c0_i32_1 = arith.constant 0 : i32
    %c0_i32_2 = arith.constant 0 : i32
    return %c0_i32, %c0_i32_0, %c0_i32_1 : i32, i32, i32
  }
  func.func @transform_7(%arg0: i32) -> (i32, i32, i32) {
    %c0_i32 = arith.constant 0 : i32
    %c0_i32_0 = arith.constant 0 : i32
    %c0_i32_1 = arith.constant 0 : i32
    %c0_i32_2 = arith.constant 0 : i32
    return %c0_i32, %c0_i32_0, %c0_i32_1 : i32, i32, i32
  }
  func.func @transform_8(%arg0: i32) -> (i32, i32, i32) {
    %c0_i32 = arith.constant 0 : i32
    %c0_i32_0 = arith.constant 0 : i32
    %c0_i32_1 = arith.constant 0 : i32
    %c0_i32_2 = arith.constant 0 : i32
    return %c0_i32, %c0_i32_0, %c0_i32_1 : i32, i32, i32
  }
  func.func @transform_9(%arg0: i32) -> (i32, i32, i32) {
    %c0_i32 = arith.constant 0 : i32
    %c0_i32_0 = arith.constant 0 : i32
    %c0_i32_1 = arith.constant 0 : i32
    %c0_i32_2 = arith.constant 0 : i32
    return %c0_i32, %c0_i32_0, %c0_i32_1 : i32, i32, i32
  }
  func.func @transform_10(%arg0: i32) -> (i32, i32, i32) {
    %c0_i32 = arith.constant 0 : i32
    %c0_i32_0 = arith.constant 0 : i32
    %c0_i32_1 = arith.constant 0 : i32
    %c0_i32_2 = arith.constant 0 : i32
    return %c0_i32, %c0_i32_0, %c0_i32_1 : i32, i32, i32
  }
  func.func @transform_11(%arg0: i32) -> (i32, i32, i32) {
    %c0_i32 = arith.constant 0 : i32
    %c0_i32_0 = arith.constant 0 : i32
    %c0_i32_1 = arith.constant 0 : i32
    %c0_i32_2 = arith.constant 0 : i32
    return %c0_i32, %c0_i32_0, %c0_i32_1 : i32, i32, i32
  }
  func.func @transform_12(%arg0: i32) -> (i32, i32, i32) {
    %c0_i32 = arith.constant 0 : i32
    %c0_i32_0 = arith.constant 0 : i32
    %c0_i32_1 = arith.constant 0 : i32
    %c0_i32_2 = arith.constant 0 : i32
    return %c0_i32, %c0_i32_0, %c0_i32_1 : i32, i32, i32
  }
  func.func @transform_13(%arg0: i32) -> (i32, i32, i32) {
    %c0_i32 = arith.constant 0 : i32
    %c0_i32_0 = arith.constant 0 : i32
    %c0_i32_1 = arith.constant 0 : i32
    %c0_i32_2 = arith.constant 0 : i32
    return %c0_i32, %c0_i32_0, %c0_i32_1 : i32, i32, i32
  }
  func.func @transform_14(%arg0: i32) -> (i32, i32, i32) {
    %c0_i32 = arith.constant 0 : i32
    %c0_i32_0 = arith.constant 0 : i32
    %c0_i32_1 = arith.constant 0 : i32
    %c0_i32_2 = arith.constant 0 : i32
    return %c0_i32, %c0_i32_0, %c0_i32_1 : i32, i32, i32
  }
  func.func @transform_15(%arg0: i32) -> (i32, i32, i32) {
    %c0_i32 = arith.constant 0 : i32
    %c0_i32_0 = arith.constant 0 : i32
    %c0_i32_1 = arith.constant 0 : i32
    %c0_i32_2 = arith.constant 0 : i32
    return %c0_i32, %c0_i32_0, %c0_i32_1 : i32, i32, i32
  }
  func.func @transform_16(%arg0: i32) -> (i32, i32) {
    %c0_i32 = arith.constant 0 : i32
    %c0_i32_0 = arith.constant 0 : i32
    %c0_i32_1 = arith.constant 0 : i32
    return %c0_i32, %c0_i32_0 : i32, i32
  }
  func.func @transform_17(%arg0: i32) -> (i32, i32) {
    %c0_i32 = arith.constant 0 : i32
    %c0_i32_0 = arith.constant 0 : i32
    %c0_i32_1 = arith.constant 0 : i32
    return %c0_i32, %c0_i32_0 : i32, i32
  }
  func.func @transform_18(%arg0: i32) -> (i32, i32) {
    %c0_i32 = arith.constant 0 : i32
    %c0_i32_0 = arith.constant 0 : i32
    return %arg0, %c0_i32 : i32, i32
  }
}

</mosaic_0001>

<bundles_post_ra>
// kernel: du_model_for_token_classification.1
= control target key start
LH: loop header
LB: loop body
LE: loop exit
PB: predicated region body
PF: predicated region fallthrough
CT: control target
= control target key end

     0   :  { %s5651_s0 = inlined_call_operand.vmem [shape: f32[16,128], index: 0, kind: input, shape index: {}]   ;;  %s5652_s1 = inlined_call_operand.vmem [shape: f32[2,1,8], index: 1, kind: input, shape index: {}]   ;;  %s5653_s2 = inlined_call_operand.vmem [shape: f32[1,128], index: 2, kind: input, shape index: {}]   ;;  %s5654_s3 = inlined_call_operand.vmem [shape: f32[1,128], index: 3, kind: input, shape index: {}]   ;;  %s5655_s4 = inlined_call_operand.vmem [shape: bf16[2,128,384], index: 4, kind: input, shape index: {}]   ;;  %s5656_s5 = inlined_call_operand.vmem [shape: f32[2,1,384], index: 5, kind: input, shape index: {}]   ;;  %s5657_s6 = inlined_call_operand.hbm [shape: bf16[2,128,128], index: 6, kind: input, shape index: {}]   ;;  %s5658_s7 = inlined_call_operand.vmem [shape: f32[2,1,128], index: 7, kind: input, shape index: {}]   ;;  %s5659_s8 = inlined_call_operand.vmem [shape: f32[2,1,128], index: 8, kind: input, shape index: {}]   ;;  %s5660_s9 = inlined_call_operand.vmem [shape: f32[2,1,128], index: 9, kind: input, shape index: {}]   ;;  %s5661_s10 = inlined_call_operand.vmem [shape: bf16[2,128,256], index: 10, kind: input, shape index: {}]   ;;  %s5662_s11 = inlined_call_operand.vmem [shape: f32[2,1,256], index: 11, kind: input, shape index: {}]   ;;  %s5663_s12 = inlined_call_operand.vmem [shape: bf16[2,256,128], index: 12, kind: input, shape index: {}]   ;;  %s5664_s13 = inlined_call_operand.vmem [shape: f32[2,1,128], index: 13, kind: input, shape index: {}]   ;;  %s5665_s14 = inlined_call_operand.vmem [shape: f32[2,1,128], index: 14, kind: input, shape index: {}]   ;;  %s5666_s15 = inlined_call_operand.hbm [shape: f32[2,1,128], index: 15, kind: input, shape index: {}]   ;;  %s5667_s16 = inlined_call_operand.vmem [shape: bf16[128,128], index: 16, kind: input, shape index: {}]   ;;  %s5668_s17 = inlined_call_operand.vmem [shape: f32[1,128], index: 17, kind: input, shape index: {}]   ;;  %s5669_s18 = inlined_call_operand.vmem [shape: f32[16,128], index: 18, kind: output, shape index: {}]  }
   0x1   :  { %5673 = sst [smem:[#allocation9_spill]] %s5651_s0 }
   0x2   :  { %5674 = sst [smem:[#allocation10_spill]] %s5652_s1 }
   0x3   :  { %5675 = sst [smem:[#allocation11_spill]] %s5653_s2 }
   0x4   :  { %5676 = sst [smem:[#allocation12_spill]] %s5669_s18 }
   0x5   :  { %23 = vsyncpa [#allocation3], 0 }
   0x6   :  { %24 = vsyncpa [#allocation5], 0  ;;  %s4827_s27 = smov 0  }
   0x7 LB: > { %5677 = sst [smem:[#allocation8_spill]] %s4718_s27  ;;  %s4720_s28 = smov [#allocation2]   ;;  %s4718_s27 = sphi %s4827_s27, %s30_s27  }
   0x8   : > { %s473_s29 = sshll.u32 %s4720_s28, 4  ;;  %s4833_s30 = sadd.s32 4294967295, %s4718_s27   ;;  %s474_s29 = int_to_ptr.vmem [resolvable:$true] %s473_s29 }
   0x9   : > { %p3872_p0 = scmp.ge.s32.totalorder %s4718_s27, 1  ;;  %p449_p1 = scmp.lt.s32.totalorder %s4718_s27, 3 }
   0xa   : > { %p5670_p3 = scmp.eq.s32.totalorder %s4833_s30, 0  ;;  %s4721_s19 = smov [#allocation4]  }
   0xb   : > { %p4837_p2 = pnand %p3872_p0, %p449_p1  ;;  %s510_s1 = sshll.u32 %s4721_s19, 4  ;;  %s4850_s1 = int_to_ptr.vmem [resolvable:$true] %s510_s1 }
   0xc   : > { %s4648_s2 = scalar_lea.hbm %s5657_s6, 2048 }
   0xd   : > { %s5678_s0 = scalar_select %p4837_p2, 1, 0 }
   0xe   : > { %p4407_p4 = pneg %p4837_p2  ;;  %p4649_p6 = scmp.ne.s32.totalorder %s5657_s6, %s4648_s2 }
   0xf   : > { %p4655_p10 = scmp.lt.u32.totalorder %s4648_s2, %s5657_s6 }
  0x10   : > { %p4846_p5 = pnand %p5670_p3, %p4407_p4 }
  0x12   : > { %p4650_p7 = pneg %p4846_p5 }
  0x14   : > { %p4651_p8 = pnand %p4650_p7, %p4649_p6 }
  0x16   : > { %p4652_p9 = pneg %p4651_p8 }
  0x18   : > { %p4657_p11 = pnand %p4655_p10, %p4652_p9 }
  0x1a   : > { %4660 = shalt.err (!%p4657_p11)
}
  0x1b   : > { %s4661_s28 = scalar_lea.vmem %s474_s29, 2048  ;;  %p4669_p1 = scmp.lt.s32.totalorder %s474_s29, %s474_s29 }
  0x1c   : > { %p4662_p12 = scmp.ne.s32.totalorder %s474_s29, %s4661_s28  ;;  %p4670_p4 = scmp.lt.s32.totalorder %s4661_s28, %s4661_s28 }
  0x1e   : > { %p4664_p13 = pnand %p4662_p12, %p4650_p7  ;;  %p4671_p3 = por %p4670_p4, %p4669_p1 }
  0x20   : > { %p4665_p0 = pneg %p4664_p13 }
  0x22   : > { %p4672_p2 = pnand %p4671_p3, %p4665_p0 }
  0x24   : > { %4675 = shalt.err (!%p4672_p2)
}
  0x25   : > { %s4722_s19 = smov 64   ;;  %s4723_s21 = smov 4  }
  0x26   : > { %4410 = dma.hbm_to_vmem [thread:$0]  (!%p4846_p5), %s5657_s6, 2048, %s474_s29, [#allocation3], %s4722_s19, %s4722_s19, %s4723_s21  }
  0x27   : > { %s4676_s25 = scalar_lea.hbm %s5666_s15, 32 }
  0x28   : > { %p4677_p6 = scmp.ne.s32.totalorder %s5666_s15, %s4676_s25  ;;  %p4683_p8 = scmp.lt.u32.totalorder %s4676_s25, %s5666_s15 }
  0x2a   : > { %p4679_p2 = pnand %p4677_p6, %p4650_p7 }
  0x2c   : > { %p4680_p3 = pneg %p4679_p2 }
  0x2e   : > { %p4685_p9 = pnand %p4683_p8, %p4680_p3 }
  0x30   : > { %4688 = shalt.err (!%p4685_p9)
}
  0x31   : > { %s4689_s29 = scalar_lea.vmem %s4850_s1, 32  ;;  %p4697_p13 = scmp.lt.s32.totalorder %s4850_s1, %s4850_s1 }
  0x32   : > { %p4690_p10 = scmp.ne.s32.totalorder %s4850_s1, %s4689_s29  ;;  %p4698_p0 = scmp.lt.s32.totalorder %s4689_s29, %s4689_s29 }
  0x34   : > { %p4692_p11 = pnand %p4690_p10, %p4650_p7  ;;  %p4699_p1 = por %p4698_p0, %p4697_p13 }
  0x36   : > { %p4693_p12 = pneg %p4692_p11 }
  0x38   : > { %p4700_p4 = pnand %p4699_p1, %p4693_p12 }
  0x3a   : > { %4703 = shalt.err (!%p4700_p4)
}
  0x3b   : > { %s4724_s18 = smov 16   ;;  %s4725_s27 = smov 1  }
  0x3c   : > { %4413 = dma.hbm_to_vmem [thread:$0]  (!%p4846_p5), %s5666_s15, 32, %s4850_s1, [#allocation5], %s4724_s18, %s4724_s18, %s4725_s27  }
  0x3d   : > { %p5680_p6 = scmp.ne.s32.totalorder %s5678_s0, 0 }
  0x3e   : > { %p5681_p7 = scmp.eq.s32.totalorder (!%p5680_p6), %s4833_s30, 0 }
  0x3f   : > { %545 = sbr.rel (%p5680_p6) target bundleno = 5807 (0x16af), region = 92 }
  0x46   : > { %4709 = dma.done.wait (%p5681_p7), [#allocation3], 2048   ;;  %p5682_p2 = pmov %p5681_p7 }
  0x48   : > { %4711 = vsyncadd (%p5682_p2), [#allocation3], 4294965248  ;;  %p5683_p3 = pmov %p5682_p2 }
  0x49   : > { %p5684_p8 = pmov %p5682_p2 }
  0x4a   : > { %4713 = dma.done.wait (%p5683_p3), [#allocation5], 32  }
  0x4b   : > { %4715 = vsyncadd (%p5684_p8), [#allocation5], 4294967264  ;;  %p604_p9 = scmp.lt.s32.totalorder %s4833_s30, 1  ;;  %s5685_s22 = sld [smem:[#allocation9_spill]]  ;;  %v4438_v1 = vld [vmem:[%s5655_s4 + $0x4] ss:$12 sps:$4 sm:$0xff]   ;;  %v681_v41 = vlaneseq }
  0x4c   : > { %v4440_v2 = vld [vmem:[%s5655_s4] ss:$12 sps:$4 sm:$0xff]   ;;  %v4726_v3 = vmov 0.0   ;;  %v4441_v4 = vld [vmem:[%s5655_s4 + $0x8] ss:$12 sps:$4 sm:$0xff]   ;;  %824 = vmatprep.subr.bf16.mxu0 %v4438_v1  ;;  %v4727_v25 = vmov 0  }
  0x4d   : > { %s5691_s30 = smov (!%p604_p9, %s4833_s30), 1  ;;  %4251 = vmatprep.subr.bf16.mxu1 %v4726_v3  ;;  %v4442_v5 = vld [vmem:[%s5655_s4 + $0x1c] ss:$12 sps:$4 sm:$0xff]   ;;  %v4444_v6 = vld [vmem:[%s5655_s4 + $0x18] ss:$12 sps:$4 sm:$0xff]   ;;  %825 = vmatpush1.bf16.msra.mxu0 %v4440_v2  ;;  %vm4728_vm0 = vmmov 0  }
  0x4e   : > { %s3879_s0 = sshll.u32 %s5691_s30, 3  ;;  %v4445_v7 = vld [vmem:[%s5655_s4 + $0x20] ss:$12 sps:$4 sm:$0xff]   ;;  %4252 = vmatpush3.bf16.msra.mxu1 %v4441_v4  ;;  %826 = vmatprep.subr.bf16.mxu0 %v4442_v5  ;;  %v4448_v13 = vld [vmem:[%s5655_s4 + $0x30] ss:$12 sps:$4 sm:$0xff]   ;;  %s5686_s19 = sld [smem:[#allocation11_spill]] }
  0x4f   : > { %v4446_v8 = vld [vmem:[%s5655_s4 + $0x34] ss:$12 sps:$4 sm:$0xff]   ;;  %4253 = vmatprep.subr.bf16.mxu1 %v4726_v3  ;;  %v4449_v14 = vld [vmem:[%s5655_s4 + $0x38] ss:$12 sps:$4 sm:$0xff]   ;;  %v4453_v17 = vld [vmem:[%s5655_s4 + $0x50] ss:$12 sps:$4 sm:$0xff]   ;;  %856 = vmatprep.mubr.bf16.mxu0 %v4727_v25 }
  0x50   : > { %v4450_v15 = vld [vmem:[%s5655_s4 + $0x4c] ss:$12 sps:$4 sm:$0xff]   ;;  %v4452_v16 = vld [vmem:[%s5655_s4 + $0x48] ss:$12 sps:$4 sm:$0xff]   ;;  %v4454_v18 = vld [vmem:[%s5655_s4 + $0x64] ss:$12 sps:$4 sm:$0xff]   ;;  %4267 = vmatprep.mubr.msk.bf16.mxu1 %vm4728_vm0, %v4726_v3 }
  0x51   : > { %s607_s2 = scalar_lea.vmem %s5685_s22, %s3879_s0  ;;  %827 = vmatpush1.bf16.msra.mxu0 %v4444_v6  ;;  %v4456_v19 = vld [vmem:[%s5655_s4 + $0x60] ss:$12 sps:$4 sm:$0xff]   ;;  %v4457_v20 = vld [vmem:[%s5655_s4 + $0x68] ss:$12 sps:$4 sm:$0xff]   ;;  %v4460_v22 = vld [vmem:[%s5655_s4 + $0x78] ss:$12 sps:$4 sm:$0xff]  }
  0x52   : > { %v616_v0 = vld [vmem:[%s607_s2] sm:$0xff]  ;;  %4254 = vmatpush3.bf16.msra.mxu1 %v4445_v7  ;;  %828 = vmatprep.subr.bf16.mxu0 %v4446_v8  ;;  %v4458_v21 = vld [vmem:[%s5655_s4 + $0x7c] ss:$12 sps:$4 sm:$0xff]   ;;  %v4466_v28 = vld [vmem:[%s5655_s4 + $0xac] ss:$12 sps:$4 sm:$0xff]   ;;  %v5018_v42 = vshrl.u32 %v681_v41, 7 }
  0x53   : > { %619 = vadd.xlane.f32.xlu0 %v616_v0  ;;  %4255 = vmatprep.subr.bf16.mxu1 %v4726_v3  ;;  %v4461_v23 = vld [vmem:[%s5655_s4 + $0x80] ss:$12 sps:$4 sm:$0xff]   ;;  %v4464_v26 = vld [vmem:[%s5655_s4 + $0x90] ss:$12 sps:$4 sm:$0xff]   ;;  %v4465_v27 = vld [vmem:[%s5655_s4 + $0x98] ss:$12 sps:$4 sm:$0xff]  }
  0x54   : > { %v4462_v24 = vld [vmem:[%s5655_s4 + $0x94] ss:$12 sps:$4 sm:$0xff]   ;;  %v4469_v30 = vld [vmem:[%s5655_s4 + $0xb0] ss:$12 sps:$4 sm:$0xff]   ;;  %v5021_v43 = vsub.s32 1, %v5018_v42  ;;  %v5029_v45 = vsub.s32 0, %v5018_v42 }
  0x55   : > { %829 = vmatpush1.bf16.msra.mxu0 %v4448_v13  ;;  %v4468_v29 = vld [vmem:[%s5655_s4 + $0xa8] ss:$12 sps:$4 sm:$0xff]   ;;  %v3881_v35 = vld [vmem:[%s5686_s19] ss:$0 sm:$0xff]  ;;  %s4729_s2 = smov 64   ;;  %vm1277_vm1 = vcmask 523264  }
  0x56   : > { %4256 = vmatpush3.bf16.msra.mxu1 %v4449_v14  ;;  %830 = vmatprep.subr.bf16.mxu0 %v4450_v15  ;;  %v3882_v37 = vld [vmem:[%s5654_s3] ss:$0 sm:$0xff]  ;;  %v4730_v58 = vmov 1983009808   ;;  %v4731_v61 = vmov 1934713408  }
  0x57   : > { %4257 = vmatprep.subr.bf16.mxu1 %v4726_v3  ;;  %v5026_v44 = vld [vmem:[%s5656_s5] sm:$0x7]  ;;  %v911_v59 = vunpack.c.l.s4 %v4730_v58  ;;  %v942_v62 = vunpack.c.l.s4 %v4731_v61  ;;  %s5687_s25 = sld [smem:[#allocation10_spill]]  ;;  %vm1370_vm2 = vcmask 64512   ;;  %vm1398_vm3 = vcmask 1043456   ;;  %s5688_s20 = sld [smem:[#allocation12_spill]] }
  0x58   : > { %v688_v46 = vrot.slane %v5026_v44, %v5021_v43  ;;  %v684_v51 = vrot.slane %v5026_v44, %v5029_v45 }
  0x59   : > { %831 = vmatpush1.bf16.msra.mxu0 %v4452_v16  ;;  %v912_v60 = vunpack.c.0.s8 %v911_v59 }
  0x5a   : > { %4258 = vmatpush3.bf16.msra.mxu1 %v4453_v17  ;;  %832 = vmatprep.subr.bf16.mxu0 %v4454_v18 }
  0x5b   : > { %4259 = vmatprep.subr.bf16.mxu1 %v4726_v3  ;;  %v5040_v63 = vsub.s32 %v912_v60, %v5018_v42 }
  0x5d   : > { %833 = vmatpush1.bf16.msra.mxu0 %v4456_v19  ;;  %s610_s26 = scalar_lea.vmem %s5687_s25, %s5691_s30  ;;  %s614_s22 = scalar_lea.vmem %s5688_s20, %s3879_s0 }
  0x5e   : > { %4260 = vmatpush3.bf16.msra.mxu1 %v4457_v20  ;;  %834 = vmatprep.subr.bf16.mxu0 %v4458_v21 }
  0x5f   : > { %4261 = vmatprep.subr.bf16.mxu1 %v4726_v3 }
  0x61   : > { %835 = vmatpush1.bf16.msra.mxu0 %v4460_v22 }
  0x62   : > { %4262 = vmatpush3.bf16.msra.mxu1 %v4461_v23  ;;  %836 = vmatprep.subr.bf16.mxu0 %v4462_v24 }
  0x63   : > { %4263 = vmatprep.subr.bf16.mxu1 %v4726_v3 }
  0x65   : > { %837 = vmatpush1.bf16.msra.mxu0 %v4464_v26 }
  0x66   : > { %4264 = vmatpush3.bf16.msra.mxu1 %v4465_v27  ;;  %838 = vmatprep.subr.bf16.mxu0 %v4466_v28 }
  0x67   : > { %4265 = vmatprep.subr.bf16.mxu1 %v4726_v3 }
  0x69   : > { %839 = vmatpush1.bf16.msra.mxu0 %v4468_v29 }
  0x6a   : > { %4266 = vmatpush3.bf16.msra.mxu1 %v4469_v30  ;;  %4271 = vmatprep.subr.bf16.mxu0 %v4726_v3 }
  0x6b   : > { %4277 = vmatprep.subr.bf16.mxu1 %v4726_v3 }
  0xe0   : > { %v620_v9 = vpop.xlane.xlu0 %619 }
  0xe1   : > { %v622_v10 = vmul.f32 0.0078125, %v620_v9 }
  0xe3   : > { %v623_v11 = vsub.f32 %v616_v0, %v622_v10  ;;  %v943_v0 = vunpack.c.0.s8 %v942_v62 }
  0xe5   : > { %v624_v12 = vmul.f32 %v623_v11, %v623_v11  ;;  %v5044_v4 = vsub.s32 %v943_v0, %v5018_v42 }
  0xe7   : > { %625 = vadd.xlane.f32.xlu0 %v624_v12 }
 0x174   : > { %v626_v31 = vpop.xlane.xlu0 %625 }
 0x175   : > { %v627_v32 = vmul.f32 0.0078125, %v626_v31 }
 0x177   : > { %v628_v33 = vadd.f32 1e-12, %v627_v32 }
 0x179   : > { %4606 = vrsqrt.f32 %v628_v33 }
 0x183   : > { %v4607_v34 = vpop.eup %4606 }
 0x184   : > { %v630_v36 = vmul.f32 %v4607_v34, %v623_v11 }
 0x186   : > { %v637_v38 = vmul.f32 %v3881_v35, %v630_v36 }
 0x188   : > { %v5010_v39 = vadd.f32 %v3882_v37, %v637_v38 }
 0x18a   : > { %v646_v40 = vpack.c.bf16 %v5010_v39, %v5010_v39 }
 0x18c   : > { %857 = vmatmul.mubr.bf16.vlgmr.msra.gmra.mrb[0].mxu0 %v646_v40  ;;  %4268 = vmatmul.mubr.bf16.vlgmr.msra.gmra.mrb[0].mxu1 %v646_v40 }
 0x18d   : > { %4273 = vmatprep.mubr.msk.bf16.mxu0 %vm4728_vm0, %v4726_v3  ;;  %4279 = vmatprep.mubr.msk.bf16.mxu1 %vm4728_vm0, %v4726_v3 }
 0x25f   : > { %v858_v47 = vpop.f32.mrb[0].mxu0  ;;  %v5033_v48 = vpop.f32.mrb[0].mxu1 }
 0x260   : > { %v860_v49 = vpop.f32.mrb[1].mxu0  ;;  %v4269_v50 = vpop.f32.mrb[1].mxu1  ;;  %v859_v57 = vadd.f32 %v858_v47, %v684_v51 }
 0x261   : > { %v861_v52 = vadd.f32 %v860_v49, %v688_v46  ;;  %v862_v53 = vpop.f32.mrb[2].mxu0  ;;  %v902_v54 = vpop.f32.mrb[2].mxu1 }
 0x262   : > { %v863_v55 = vpop.f32.mrb[3].mxu0  ;;  %v4270_v56 = vpop.f32.mrb[3].mxu1  ;;  %v909_v12 = vcombine.high %v859_v57, %v4726_v3  ;;  %v916_v18 = vrot.slane %v859_v57, %v5040_v63 }
 0x263   : > { %1028 = vrot.lane.b32.xlu1 %v861_v52, %s4729_s2  ;;  %v1031_v1 = vcombine.high %v861_v52, %v4726_v3  ;;  %v1038_v5 = vrot.slane %v861_v52, %v5040_v63 }
 0x264   : > { %v923_v26 = vrot.slane %v909_v12, %v5040_v63 }
 0x265   : > { %v1045_v8 = vrot.slane %v1031_v1, %v5040_v63 }
 0x267   : > { %906 = vrot.lane.b32.xlu1 %v859_v57, %s4729_s2 }
 0x2d5   : > { %v1029_v2 = vpop.permute.xlu1 %1028 }
 0x2d6   : > { %v1046_v6 = vcombine.high %v1029_v2, %v4726_v3  ;;  %v1053_v7 = vrot.slane %v1029_v2, %v5040_v63 }
 0x2d8   : > { %v1060_v9 = vrot.slane %v1046_v6, %v5040_v63  ;;  %v1061_v10 = vcombine.low %v1038_v5, %v1053_v7  ;;  %v1062_v11 = vcombine.high %v1038_v5, %v1053_v7 }
 0x2d9   : > { %v907_v13 = vpop.permute.xlu1 %906 }
 0x2da   : > { %v1069_v14 = vrot.slane %v1061_v10, %v5044_v4  ;;  %v1076_v15 = vrot.slane %v1062_v11, %v5044_v4  ;;  %v1077_v16 = vcombine.low %v1045_v8, %v1060_v9  ;;  %v1078_v17 = vcombine.high %v1045_v8, %v1060_v9 }
 0x2db   : > { %v924_v19 = vcombine.high %v907_v13, %v4726_v3  ;;  %v931_v20 = vrot.slane %v907_v13, %v5040_v63  ;;  %v5091_v13 = vld [vmem:[%s610_s26] ss:$0 sm:$0xff] }
 0x2dc   : > { %v1085_v21 = vrot.slane %v1077_v16, %v5044_v4  ;;  %v1092_v22 = vrot.slane %v1078_v17, %v5044_v4  ;;  %v1097_v23 = vcombine.low %v1069_v14, %v1076_v15  ;;  %v3909_v24 = vcombine.high %v1069_v14, %v1076_v15 }
 0x2dd   : > { %v938_v27 = vrot.slane %v924_v19, %v5040_v63  ;;  %v939_v28 = vcombine.low %v916_v18, %v931_v20  ;;  %v940_v29 = vcombine.high %v916_v18, %v931_v20 }
 0x2de   : > { %v1104_v30 = vrot.slane %v1097_v23, %v5040_v63  ;;  %v1112_v31 = vrot.slane %v3909_v24, %v5040_v63  ;;  %v1113_v32 = vcombine.low %v1085_v21, %v1092_v22  ;;  %v3910_v33 = vcombine.high %v1085_v21, %v1092_v22 }
 0x2df   : > { %v947_v34 = vrot.slane %v939_v28, %v5044_v4  ;;  %v954_v35 = vrot.slane %v940_v29, %v5044_v4  ;;  %v955_v36 = vcombine.low %v923_v26, %v938_v27  ;;  %v956_v37 = vcombine.high %v923_v26, %v938_v27 }
 0x2e0   : > { %v1120_v38 = vrot.slane %v1113_v32, %v5040_v63  ;;  %v1128_v40 = vrot.slane %v3910_v33, %v5040_v63  ;;  %v1129_v41 = vcombine.low %v1104_v30, %v1112_v31 }
 0x2e1   : > { %v963_v46 = vrot.slane %v955_v36, %v5044_v4  ;;  %v970_v47 = vrot.slane %v956_v37, %v5044_v4  ;;  %v975_v49 = vcombine.low %v947_v34, %v954_v35  ;;  %v3907_v50 = vcombine.high %v947_v34, %v954_v35 }
 0x2e2   : > { %v1137_v51 = vcombine.low %v1120_v38, %v1128_v40  ;;  %v1136_v56 = vrot.slane %v1129_v41, %v5044_v4  ;;  %v691_v37 = vsub.s32 2, %v5018_v42 }
 0x2e3   : > { %v982_v52 = vrot.slane %v975_v49, %v5040_v63  ;;  %v990_v53 = vrot.slane %v3907_v50, %v5040_v63  ;;  %v991_v54 = vcombine.low %v963_v46, %v970_v47  ;;  %v3908_v55 = vcombine.high %v963_v46, %v970_v47 }
 0x2e4   : > { %v1144_v57 = vrot.slane %v1137_v51, %v5044_v4  ;;  %v692_v38 = vrot.slane %v5026_v44, %v691_v37 }
 0x2e5   : > { %v998_v58 = vrot.slane %v991_v54, %v5040_v63  ;;  %v1006_v59 = vrot.slane %v3908_v55, %v5040_v63  ;;  %v1007_v60 = vcombine.low %v982_v52, %v990_v53 }
 0x2e6   : > { %v1145_v61 = vcombine.low %v1136_v56, %v1144_v57  ;;  %v1146_v62 = vcombine.high %v1136_v56, %v1144_v57  ;;  %v900_v40 = vadd.f32 %v5033_v48, %v692_v38 }
 0x2e7   : > { %v1015_v0 = vcombine.low %v998_v58, %v1006_v59  ;;  %v1014_v6 = vrot.slane %v1007_v60, %v5044_v4 }
 0x2e8   : > { %v1147_v1 = vpack.c.bf16 %v1145_v61, %v1145_v61  ;;  %v1148_v2 = vpack.c.bf16 %v1146_v62, %v1146_v62  ;;  %v1153_v47 = vcombine.high %v900_v40, %v4726_v3  ;;  %v1160_v50 = vrot.slane %v900_v40, %v5040_v63 }
 0x2e9   : > { %v1022_v5 = vrot.slane %v1015_v0, %v5044_v4 }
 0x2ea   : > { %v1282_v7 = vsel %vm1277_vm1, %v1147_v1, 0  ;;  %v1328_v8 = vsel %vm1277_vm1, %v1148_v2, 0  ;;  %v1167_v53 = vrot.slane %v1153_v47, %v5040_v63 }
 0x2eb   : > { %4272 = vmatpush3.bf16.xpose.msra.mxu0 %v1282_v7  ;;  %4278 = vmatpush3.bf16.xpose.msra.mxu1 %v1328_v8  ;;  %v1023_v9 = vcombine.low %v1014_v6, %v1022_v5  ;;  %v1024_v10 = vcombine.high %v1014_v6, %v1022_v5 }
 0x2ec   : > { %4283 = vmatprep.subr.bf16.mxu0 %v4726_v3  ;;  %4289 = vmatprep.subr.bf16.mxu1 %v4726_v3 }
 0x2ed   : > { %v1025_v11 = vpack.c.bf16 %v1023_v9, %v1023_v9  ;;  %v1026_v12 = vpack.c.bf16 %v1024_v10, %v1024_v10 }
 0x2f2   : > { %4274 = vmatmul.mubr.msk.bf16.vlgmr.msra.gmra.mrb[4].mxu0 %vm1277_vm1, %v1025_v11  ;;  %4280 = vmatmul.mubr.msk.bf16.vlgmr.msra.gmra.mrb[4].mxu1 %vm1277_vm1, %v1026_v12 }
 0x2f3   : > { %4285 = vmatprep.mubr.msk.bf16.mxu0 %vm4728_vm0, %v4726_v3  ;;  %4291 = vmatprep.mubr.msk.bf16.mxu1 %vm4728_vm0, %v4726_v3 }
 0x3c5   : > { %v1318_v14 = vpop.f32.mrb[4].mxu0  ;;  %v1364_v15 = vpop.f32.mrb[4].mxu1 }
 0x3c6   : > { %v1319_v16 = vadd.f32 %v5091_v13, %v1318_v14  ;;  %v1365_v17 = vadd.f32 %v5091_v13, %v1364_v15  ;;  %v4275_v18 = vpop.f32.mrb[5].mxu0  ;;  %v4281_v19 = vpop.f32.mrb[5].mxu1 }
 0x3c7   : > { %v1321_v20 = vpop.f32.mrb[6].mxu0  ;;  %v1367_v21 = vpop.f32.mrb[6].mxu1 }
 0x3c8   : > { %v4276_v22 = vpop.f32.mrb[7].mxu0  ;;  %v4282_v23 = vpop.f32.mrb[7].mxu1  ;;  %v1374_v24 = vsel %vm1370_vm2, %v1365_v17, -inf  ;;  %v1371_v26 = vsel %vm1370_vm2, %v1319_v16, -inf }
 0x3c9   : > { %1375 = vmax.xlane.f32.xlu1 %v1374_v24  ;;  %1372 = vmax.xlane.f32.xlu0 %v1371_v26  ;;  %v4470_v26 = vld [vmem:[#allocation2] sm:$0xff]  }
 0x456   : > { %v1376_v27 = vpop.xlane.xlu1 %1375  ;;  %v1373_v28 = vpop.xlane.xlu0 %1372 }
 0x457   : > { %v1378_v29 = vsub.f32 %v1365_v17, %v1376_v27  ;;  %v1377_v30 = vsub.f32 %v1319_v16, %v1373_v28  ;;  %v4471_v27 = vld [vmem:[#allocation2 + $0x8] sm:$0xff]   ;;  %v4472_v28 = vld [vmem:[#allocation2 + $0x10] sm:$0xff]  }
 0x459   : > { %v1379_v31 = vmul.f32 1.442695, %v1377_v30  ;;  %v1381_v32 = vmul.f32 1.442695, %v1378_v29  ;;  %v4473_v29 = vld [vmem:[#allocation2 + $0x18] sm:$0xff]   ;;  %v4474_v30 = vld [vmem:[#allocation2 + $0x20] sm:$0xff]  }
 0x45b   : > { %4608 = vpow2.f32 %v1379_v31  ;;  %v4475_v31 = vld [vmem:[#allocation2 + $0x28] sm:$0xff]  }
 0x45c   : > { %4610 = vpow2.f32 %v1381_v32  ;;  %v4476_v32 = vld [vmem:[#allocation2 + $0x30] sm:$0xff]  }
 0x465   : > { %v4609_v33 = vpop.eup %4608 }
 0x466   : > { %v1383_v34 = vsel %vm1370_vm2, %v4609_v33, 0.0  ;;  %v4611_v35 = vpop.eup %4610 }
 0x467   : > { %1384 = vadd.xlane.f32.xlu0 %v1383_v34  ;;  %v1386_v36 = vsel %vm1370_vm2, %v4611_v35, 0.0 }
 0x46b   : > { %1387 = vadd.xlane.f32.xlu0 %v1386_v36 }
 0x481   : > { %1150 = vrot.lane.b32.xlu0 %v900_v40, %s4729_s2 }
 0x4f4   : > { %v1385_v41 = vpop.xlane.xlu0 %1384 }
 0x4f5   : > { %4612 = vrcp.f32 %v1385_v41 }
 0x4f8   : > { %v1388_v46 = vpop.xlane.xlu0 %1387 }
 0x4f9   : > { %4614 = vrcp.f32 %v1388_v46 }
 0x4fc   : > { %v1151_v49 = vpop.permute.xlu0 %1150 }
 0x4fd   : > { %v1168_v51 = vcombine.high %v1151_v49, %v4726_v3  ;;  %v1175_v52 = vrot.slane %v1151_v49, %v5040_v63 }
 0x4ff   : > { %v1182_v54 = vrot.slane %v1168_v51, %v5040_v63  ;;  %v1183_v44 = vcombine.low %v1160_v50, %v1175_v52  ;;  %v1184_v55 = vcombine.high %v1160_v50, %v1175_v52  ;;  %v4613_v10 = vpop.eup %4612 }
 0x500   : > { %v1391_v17 = vmul.f32 %v4613_v10, %v4609_v33 }
 0x501   : > { %v1191_v48 = vrot.slane %v1183_v44, %v5044_v4  ;;  %v1198_v56 = vrot.slane %v1184_v55, %v5044_v4  ;;  %v1199_v57 = vcombine.low %v1167_v53, %v1182_v54  ;;  %v1200_v58 = vcombine.high %v1167_v53, %v1182_v54  ;;  %v4477_v55 = vld [vmem:[#allocation2 + $0x38] sm:$0xff]  }
 0x502   : > { %v1393_v23 = vpack.c.bf16 %v1391_v17, %v1391_v17 }
 0x503   : > { %v1207_v59 = vrot.slane %v1199_v57, %v5044_v4  ;;  %v1214_v60 = vrot.slane %v1200_v58, %v5044_v4  ;;  %v1219_v61 = vcombine.low %v1191_v48, %v1198_v56  ;;  %v3911_v62 = vcombine.high %v1191_v48, %v1198_v56  ;;  %v4615_v14 = vpop.eup %4614 }
 0x504   : > { %v1392_v18 = vmul.f32 %v4615_v14, %v4611_v35 }
 0x505   : > { %v1226_v0 = vrot.slane %v1219_v61, %v5040_v63  ;;  %v1234_v1 = vrot.slane %v3911_v62, %v5040_v63  ;;  %v1235_v2 = vcombine.low %v1207_v59, %v1214_v60  ;;  %v3912_v5 = vcombine.high %v1207_v59, %v1214_v60 }
 0x506   : > { %v1394_v24 = vpack.c.bf16 %v1392_v18, %v1392_v18  ;;  %v3920_v18 = vld [vmem:[%s5658_s7] ss:$0 sm:$0xff] }
 0x507   : > { %v1242_v6 = vrot.slane %v1235_v2, %v5040_v63  ;;  %v1250_v7 = vrot.slane %v3912_v5, %v5040_v63  ;;  %v1251_v8 = vcombine.low %v1226_v0, %v1234_v1 }
 0x509   : > { %v1259_v9 = vcombine.low %v1242_v6, %v1250_v7  ;;  %v1258_v11 = vrot.slane %v1251_v8, %v5044_v4 }
 0x50b   : > { %v1266_v12 = vrot.slane %v1259_v9, %v5044_v4 }
 0x50d   : > { %v1267_v15 = vcombine.low %v1258_v11, %v1266_v12  ;;  %v1268_v16 = vcombine.high %v1258_v11, %v1266_v12 }
 0x50f   : > { %v1269_v19 = vpack.c.bf16 %v1267_v15, %v1267_v15  ;;  %v1270_v20 = vpack.c.bf16 %v1268_v16, %v1268_v16 }
 0x511   : > { %v1400_v21 = vsel %vm1398_vm3, %v1269_v19, 0  ;;  %v1446_v22 = vsel %vm1398_vm3, %v1270_v20, 0 }
 0x512   : > { %4284 = vmatpush3.bf16.msra.mxu0 %v1400_v21  ;;  %4290 = vmatpush3.bf16.msra.mxu1 %v1446_v22 }
 0x513   : > { %4295 = vmatprep.subr.bf16.mxu0 %v4726_v3 }
 0x515   : > { %4286 = vmatmul.mubr.msk.bf16.vlgmr.msra.gmra.mrb[8].mxu0 %vm1370_vm2, %v1393_v23  ;;  %4292 = vmatmul.mubr.msk.bf16.vlgmr.msra.gmra.mrb[8].mxu1 %vm1370_vm2, %v1394_v24 }
 0x516   : > { %4311 = vmatprep.mubr.msk.bf16.mxu0 %vm4728_vm0, %v4726_v3  ;;  %1890 = vmatprep.mubr.bf16.mxu1 %v4727_v25 }
 0x517   : > { %4296 = vmatpush3.bf16.msra.mxu0 %v4470_v26  ;;  %v4478_v26 = vld [vmem:[%s5661_s10] ss:$8 sps:$4 sm:$0xff]  }
 0x518   : > { %4297 = vmatprep.subr.bf16.mxu0 %v4726_v3 }
 0x51b   : > { %4298 = vmatpush3.bf16.msra.mxu0 %v4471_v27  ;;  %v4480_v27 = vld [vmem:[%s5661_s10 + $0x4] ss:$8 sps:$4 sm:$0xff]  }
 0x51c   : > { %4299 = vmatprep.subr.bf16.mxu0 %v4726_v3  ;;  %1858 = vmatprep.subr.bf16.mxu1 %v4480_v27 }
 0x51d   : > { %1859 = vmatpush1.bf16.msra.mxu1 %v4478_v26 }
 0x51f   : > { %4300 = vmatpush3.bf16.msra.mxu0 %v4472_v28  ;;  %v4483_v28 = vld [vmem:[%s5661_s10 + $0x14] ss:$8 sps:$4 sm:$0xff]  }
 0x520   : > { %4301 = vmatprep.subr.bf16.mxu0 %v4726_v3  ;;  %1860 = vmatprep.subr.bf16.mxu1 %v4483_v28 }
 0x523   : > { %4302 = vmatpush3.bf16.msra.mxu0 %v4473_v29  ;;  %v4481_v29 = vld [vmem:[%s5661_s10 + $0x10] ss:$8 sps:$4 sm:$0xff]  }
 0x524   : > { %4303 = vmatprep.subr.bf16.mxu0 %v4726_v3  ;;  %1861 = vmatpush1.bf16.msra.mxu1 %v4481_v29 }
 0x527   : > { %4304 = vmatpush3.bf16.msra.mxu0 %v4474_v30  ;;  %v4484_v30 = vld [vmem:[%s5661_s10 + $0x20] ss:$8 sps:$4 sm:$0xff]  }
 0x528   : > { %4305 = vmatprep.subr.bf16.mxu0 %v4726_v3 }
 0x52b   : > { %4306 = vmatpush3.bf16.msra.mxu0 %v4475_v31 }
 0x52c   : > { %4307 = vmatprep.subr.bf16.mxu0 %v4726_v3 }
 0x52f   : > { %4308 = vmatpush3.bf16.msra.mxu0 %v4476_v32 }
 0x530   : > { %4309 = vmatprep.subr.bf16.mxu0 %v4726_v3 }
 0x533   : > { %4310 = vmatpush3.bf16.msra.mxu0 %v4477_v55  ;;  %v3929_v55 = vld [vmem:[%s5659_s8] ss:$0 sm:$0xff] }
 0x5e8   : > { %v1436_v33 = vpop.f32.mrb[8].mxu0  ;;  %v1482_v34 = vpop.f32.mrb[8].mxu1 }
 0x5e9   : > { %v1488_v35 = vcombine.high %v1436_v33, %v4726_v3  ;;  %v1495_v36 = vrot.slane %v1436_v33, %v5040_v63  ;;  %v1503_v38 = vcombine.high %v1482_v34, %v4726_v3  ;;  %v1510_v40 = vrot.slane %v1482_v34, %v5040_v63  ;;  %v4287_v41 = vpop.f32.mrb[9].mxu0  ;;  %v4293_v46 = vpop.f32.mrb[9].mxu1 }
 0x5ea   : > { %v1439_v47 = vpop.f32.mrb[10].mxu0  ;;  %v1485_v49 = vpop.f32.mrb[10].mxu1  ;;  %v4495_v41 = vld [vmem:[%s5661_s10 + $0x54] ss:$8 sps:$4 sm:$0xff]   ;;  %v4493_v46 = vld [vmem:[%s5661_s10 + $0x50] ss:$8 sps:$4 sm:$0xff]  }
 0x5eb   : > { %v1502_v50 = vrot.slane %v1488_v35, %v5040_v63  ;;  %v1517_v51 = vrot.slane %v1503_v38, %v5040_v63  ;;  %v1518_v52 = vcombine.low %v1495_v36, %v1510_v40  ;;  %v1519_v53 = vcombine.high %v1495_v36, %v1510_v40  ;;  %v4288_v54 = vpop.f32.mrb[11].mxu0  ;;  %v4294_v44 = vpop.f32.mrb[11].mxu1  ;;  %v4489_v35 = vld [vmem:[%s5661_s10 + $0x34] ss:$8 sps:$4 sm:$0xff]   ;;  %v4487_v36 = vld [vmem:[%s5661_s10 + $0x30] ss:$8 sps:$4 sm:$0xff]  }
 0x5ec   : > { %v4492_v38 = vld [vmem:[%s5661_s10 + $0x44] ss:$8 sps:$4 sm:$0xff]   ;;  %v4490_v40 = vld [vmem:[%s5661_s10 + $0x40] ss:$8 sps:$4 sm:$0xff]  }
 0x5ed   : > { %v1526_v48 = vrot.slane %v1518_v52, %v5044_v4  ;;  %v1533_v56 = vrot.slane %v1519_v53, %v5044_v4  ;;  %v1534_v57 = vcombine.low %v1502_v50, %v1517_v51  ;;  %v1535_v58 = vcombine.high %v1502_v50, %v1517_v51  ;;  %v4498_v47 = vld [vmem:[%s5661_s10 + $0x64] ss:$8 sps:$4 sm:$0xff]   ;;  %v4496_v49 = vld [vmem:[%s5661_s10 + $0x60] ss:$8 sps:$4 sm:$0xff]   ;;  %v4501_v50 = vld [vmem:[%s5661_s10 + $0x74] ss:$8 sps:$4 sm:$0xff]  }
 0x5ee   : > { %v4499_v51 = vld [vmem:[%s5661_s10 + $0x70] ss:$8 sps:$4 sm:$0xff]  }
 0x5ef   : > { %v1542_v59 = vrot.slane %v1534_v57, %v5044_v4  ;;  %v1549_v60 = vrot.slane %v1535_v58, %v5044_v4  ;;  %v1554_v61 = vcombine.low %v1526_v48, %v1533_v56  ;;  %v3918_v62 = vcombine.high %v1526_v48, %v1533_v56  ;;  %v3930_v56 = vld [vmem:[%s5660_s9] ss:$0 sm:$0xff] }
 0x5f1   : > { %v1561_v0 = vrot.slane %v1554_v61, %v5040_v63  ;;  %v1569_v1 = vrot.slane %v3918_v62, %v5040_v63  ;;  %v1570_v2 = vcombine.low %v1542_v59, %v1549_v60  ;;  %v3919_v5 = vcombine.high %v1542_v59, %v1549_v60  ;;  %v4502_v60 = vld [vmem:[%s5663_s12 + $0x40] sm:$0xff]   ;;  %v4504_v62 = vld [vmem:[%s5663_s12 + $0x48] sm:$0xff]  }
 0x5f2   : > { %v4503_v61 = vld [vmem:[%s5663_s12] sm:$0xff]   ;;  %4172 = vmatprep.subr.bf16.mxu0 %v4502_v60 }
 0x5f3   : > { %v1577_v6 = vrot.slane %v1570_v2, %v5040_v63  ;;  %v1585_v7 = vrot.slane %v3919_v5, %v5040_v63  ;;  %v1586_v8 = vcombine.low %v1561_v0, %v1569_v1  ;;  %v4505_v0 = vld [vmem:[%s5663_s12 + $0x8] sm:$0xff]   ;;  %v4506_v1 = vld [vmem:[%s5663_s12 + $0x50] sm:$0xff]   ;;  %v4508_v5 = vld [vmem:[%s5663_s12 + $0x58] sm:$0xff]  }
 0x5f4   : > { %v4507_v2 = vld [vmem:[%s5663_s12 + $0x10] sm:$0xff]  }
 0x5f5   : > { %v1594_v9 = vcombine.low %v1577_v6, %v1585_v7  ;;  %v1593_v10 = vrot.slane %v1586_v8, %v5044_v4  ;;  %v4509_v6 = vld [vmem:[%s5663_s12 + $0x18] sm:$0xff]   ;;  %v4510_v7 = vld [vmem:[%s5663_s12 + $0x60] sm:$0xff]  }
 0x5f6   : > { %v4511_v8 = vld [vmem:[%s5663_s12 + $0x20] sm:$0xff]  }
 0x5f7   : > { %v1601_v11 = vrot.slane %v1594_v9, %v5044_v4  ;;  %v4512_v9 = vld [vmem:[%s5663_s12 + $0x68] sm:$0xff]  }
 0x5f9   : > { %v1603_v12 = vcombine.high %v1593_v10, %v1601_v11  ;;  %v1602_v14 = vcombine.low %v1593_v10, %v1601_v11  ;;  %v4513_v10 = vld [vmem:[%s5663_s12 + $0x28] sm:$0xff]   ;;  %v4514_v11 = vld [vmem:[%s5663_s12 + $0x70] sm:$0xff]  }
 0x5fb   : > { %1605 = vrot.lane.b32.xlu0 %v1603_v12, %s4729_s2  ;;  %v4515_v12 = vld [vmem:[%s5663_s12 + $0x30] sm:$0xff]  }
 0x66d   : > { %v1606_v15 = vpop.permute.xlu0 %1605 }
 0x66e   : > { %v1608_v16 = vsel %vm1277_vm1, %v1602_v14, %v1606_v15  ;;  %v4516_v14 = vld [vmem:[%s5663_s12 + $0x78] sm:$0xff]  }
 0x66f   : > { %v1609_v17 = vpack.c.bf16 %v1608_v16, %v1608_v16  ;;  %v4517_v15 = vld [vmem:[%s5663_s12 + $0x38] sm:$0xff]   ;;  %v1766_v16 = vld [vmem:[%s5662_s11] sm:$0x3] }
 0x671   : > { %4312 = vmatmul.mubr.bf16.vlgmr.msra.gmra.mrb[12].mxu0 %v1609_v17  ;;  %v1771_v17 = vrot.slane %v1766_v16, %v5029_v45 }
 0x672   : > { %4173 = vmatpush3.bf16.msra.mxu0 %v4503_v61 }
 0x673   : > { %4174 = vmatprep.subr.bf16.mxu0 %v4504_v62 }
 0x676   : > { %4175 = vmatpush3.bf16.msra.mxu0 %v4505_v0 }
 0x677   : > { %4176 = vmatprep.subr.bf16.mxu0 %v4506_v1 }
 0x67a   : > { %4177 = vmatpush3.bf16.msra.mxu0 %v4507_v2 }
 0x67b   : > { %4178 = vmatprep.subr.bf16.mxu0 %v4508_v5 }
 0x67e   : > { %4179 = vmatpush3.bf16.msra.mxu0 %v4509_v6 }
 0x67f   : > { %4180 = vmatprep.subr.bf16.mxu0 %v4510_v7 }
 0x682   : > { %4181 = vmatpush3.bf16.msra.mxu0 %v4511_v8 }
 0x683   : > { %4182 = vmatprep.subr.bf16.mxu0 %v4512_v9 }
 0x686   : > { %4183 = vmatpush3.bf16.msra.mxu0 %v4513_v10 }
 0x687   : > { %4184 = vmatprep.subr.bf16.mxu0 %v4514_v11 }
 0x68a   : > { %4185 = vmatpush3.bf16.msra.mxu0 %v4515_v12 }
 0x68b   : > { %4186 = vmatprep.subr.bf16.mxu0 %v4516_v14 }
 0x68e   : > { %4187 = vmatpush3.bf16.msra.mxu0 %v4517_v15 }
 0x68f   : > { %4315 = vmatprep.subr.bf16.mxu0 %v4726_v3 }
 0x744   : > { %v1715_v19 = vpop.f32.mrb[12].mxu0 }
 0x745   : > { %v1716_v20 = vadd.f32 %v3920_v18, %v1715_v19  ;;  %v4313_v21 = vpop.f32.mrb[13].mxu0  ;;  %v1775_v18 = vrot.slane %v1766_v16, %v5021_v43 }
 0x746   : > { %v1718_v22 = vpop.f32.mrb[14].mxu0 }
 0x747   : > { %v4314_v23 = vpop.f32.mrb[15].mxu0  ;;  %v1721_v24 = vadd.f32 %v1716_v20, %v5010_v39  ;;  %v4486_v39 = vld [vmem:[%s5661_s10 + $0x24] ss:$8 sps:$4 sm:$0xff]  }
 0x748   : > { %1862 = vmatprep.subr.bf16.mxu1 %v4486_v39 }
 0x749   : > { %1724 = vadd.xlane.f32.xlu1 %v1721_v24  ;;  %1863 = vmatpush1.bf16.msra.mxu1 %v4484_v30 }
 0x74a   : > { %1864 = vmatprep.subr.bf16.mxu1 %v4489_v35 }
 0x74d   : > { %1865 = vmatpush1.bf16.msra.mxu1 %v4487_v36 }
 0x74e   : > { %1866 = vmatprep.subr.bf16.mxu1 %v4492_v38 }
 0x751   : > { %1867 = vmatpush1.bf16.msra.mxu1 %v4490_v40 }
 0x752   : > { %1868 = vmatprep.subr.bf16.mxu1 %v4495_v41 }
 0x755   : > { %1869 = vmatpush1.bf16.msra.mxu1 %v4493_v46 }
 0x756   : > { %1870 = vmatprep.subr.bf16.mxu1 %v4498_v47 }
 0x759   : > { %1871 = vmatpush1.bf16.msra.mxu1 %v4496_v49 }
 0x75a   : > { %1872 = vmatprep.subr.bf16.mxu1 %v4501_v50 }
 0x75d   : > { %1873 = vmatpush1.bf16.msra.mxu1 %v4499_v51 }
 0x7d6   : > { %v1725_v31 = vpop.xlane.xlu1 %1724 }
 0x7d7   : > { %v1726_v32 = vmul.f32 0.0078125, %v1725_v31 }
 0x7d9   : > { %v1727_v33 = vsub.f32 %v1721_v24, %v1726_v32 }
 0x7db   : > { %v1728_v34 = vmul.f32 %v1727_v33, %v1727_v33 }
 0x7dd   : > { %1729 = vadd.xlane.f32.xlu0 %v1728_v34 }
 0x86a   : > { %v1730_v52 = vpop.xlane.xlu0 %1729 }
 0x86b   : > { %v1731_v53 = vmul.f32 0.0078125, %v1730_v52 }
 0x86d   : > { %v1732_v54 = vadd.f32 1e-12, %v1731_v53 }
 0x86f   : > { %4616 = vrsqrt.f32 %v1732_v54 }
 0x879   : > { %v4617_v44 = vpop.eup %4616 }
 0x87a   : > { %v1734_v48 = vmul.f32 %v4617_v44, %v1727_v33 }
 0x87c   : > { %v1741_v57 = vmul.f32 %v3929_v55, %v1734_v48 }
 0x87e   : > { %v5212_v58 = vadd.f32 %v3930_v56, %v1741_v57 }
 0x880   : > { %v1749_v59 = vpack.c.bf16 %v5212_v58, %v5212_v58 }
 0x882   : > { %1891 = vmatmul.mubr.bf16.vlgmr.msra.gmra.mrb[12].mxu1 %v1749_v59 }
 0x883   : > { %2370 = vmatprep.mubr.bf16.mxu1 %v4727_v25 }
 0x955   : > { %v1892_v19 = vpop.f32.mrb[12].mxu1 }
 0x956   : > { %v1893_v20 = vadd.f32 %v1892_v19, %v1771_v17  ;;  %v1894_v21 = vpop.f32.mrb[13].mxu1 }
 0x957   : > { %v1895_v22 = vadd.f32 %v1894_v21, %v1775_v18  ;;  %v1896_v23 = vpop.f32.mrb[14].mxu1 }
 0x958   : > { %v1901_v24 = vmul.f32 0.70710677, %v1893_v20  ;;  %v1897_v26 = vpop.f32.mrb[15].mxu1  ;;  %v1899_v14 = vmul.f32 0.5, %v1893_v20 }
 0x959   : > { %v1902_v27 = vmul.f32 0.70710677, %v1895_v22  ;;  %v1900_v17 = vmul.f32 0.5, %v1895_v22 }
 0x95a   : > { %v1903_v28 = vand.u32 2147483647, %v1901_v24  ;;  %vm1943_vm4 = vcmp.lt.f32.partialorder %v1901_v24, 0.0  ;;  %v3947_v24 = vld [vmem:[%s5664_s13] ss:$0 sm:$0xff] }
 0x95b   : > { %v1904_v29 = vand.u32 2147483647, %v1902_v27  ;;  %vm1944_vm5 = vcmp.lt.f32.partialorder %v1902_v27, 0.0 }
 0x95c   : > { %v1905_v39 = vmul.f32 0.3275911, %v1903_v28  ;;  %v1931_v33 = vsub.f32 0.0, %v1903_v28 }
 0x95d   : > { %v1906_v30 = vmul.f32 0.3275911, %v1904_v29  ;;  %v1932_v34 = vsub.f32 0.0, %v1904_v29 }
 0x95e   : > { %v1907_v31 = vadd.f32 1.0, %v1905_v39  ;;  %v1933_v36 = vmul.f32 %v1931_v33, %v1903_v28  ;;  %v4521_v33 = vld [vmem:[%s5655_s4 + $0xc8] ss:$12 sps:$4 sm:$0xff]  }
 0x95f   : > { %v1908_v32 = vadd.f32 1.0, %v1906_v30  ;;  %v1934_v41 = vmul.f32 %v1932_v34, %v1904_v29  ;;  %v4524_v34 = vld [vmem:[%s5655_s4 + $0xdc] ss:$12 sps:$4 sm:$0xff]  }
 0x960   : > { %4618 = vrcp.f32 %v1907_v31  ;;  %v1935_v49 = vmul.f32 1.442695, %v1933_v36  ;;  %v4518_v31 = vld [vmem:[%s5655_s4 + $0xc0] ss:$12 sps:$4 sm:$0xff]  }
 0x961   : > { %4620 = vrcp.f32 %v1908_v32  ;;  %v1937_v52 = vmul.f32 1.442695, %v1934_v41  ;;  %v4520_v32 = vld [vmem:[%s5655_s4 + $0xc4] ss:$12 sps:$4 sm:$0xff]   ;;  %v4528_v36 = vld [vmem:[%s5655_s4 + $0xf4] ss:$12 sps:$4 sm:$0xff]  }
 0x962   : > { %4622 = vpow2.f32 %v1935_v49  ;;  %2338 = vmatprep.subr.bf16.mxu1 %v4520_v32  ;;  %v4529_v49 = vld [vmem:[%s5655_s4 + $0xf8] ss:$12 sps:$4 sm:$0xff]  }
 0x963   : > { %4624 = vpow2.f32 %v1937_v52  ;;  %2339 = vmatpush1.bf16.msra.mxu1 %v4518_v31  ;;  %v4533_v52 = vld [vmem:[%s5655_s4 + $0x110] ss:$12 sps:$4 sm:$0xff]  }
 0x964   : > { %2340 = vmatprep.subr.bf16.mxu1 %v4524_v34 }
 0x96a   : > { %v4619_v35 = vpop.eup %4618 }
 0x96b   : > { %v4621_v38 = vpop.eup %4620  ;;  %v1913_v40 = vmul.f32 1.0614054, %v4619_v35 }
 0x96c   : > { %v1914_v46 = vmul.f32 1.0614054, %v4621_v38  ;;  %v4623_v1 = vpop.eup %4622 }
 0x96d   : > { %v1915_v47 = vadd.f32 -1.4531521, %v1913_v40  ;;  %v4625_v5 = vpop.eup %4624 }
 0x96e   : > { %v1916_v50 = vadd.f32 -1.4531521, %v1914_v46 }
 0x96f   : > { %v1917_v51 = vmul.f32 %v4619_v35, %v1915_v47 }
 0x970   : > { %v1918_v53 = vmul.f32 %v4621_v38, %v1916_v50  ;;  %v4532_v50 = vld [vmem:[%s5655_s4 + $0x10c] ss:$12 sps:$4 sm:$0xff]  }
 0x971   : > { %v1919_v54 = vadd.f32 1.4214138, %v1917_v51  ;;  %v4530_v51 = vld [vmem:[%s5655_s4 + $0x108] ss:$12 sps:$4 sm:$0xff]  }
 0x972   : > { %v1920_v44 = vadd.f32 1.4214138, %v1918_v53  ;;  %v4536_v53 = vld [vmem:[%s5655_s4 + $0x124] ss:$12 sps:$4 sm:$0xff]  }
 0x973   : > { %v1921_v55 = vmul.f32 %v4619_v35, %v1919_v54  ;;  %v4534_v54 = vld [vmem:[%s5655_s4 + $0x120] ss:$12 sps:$4 sm:$0xff]  }
 0x974   : > { %v1922_v48 = vmul.f32 %v4621_v38, %v1920_v44  ;;  %v4537_v44 = vld [vmem:[%s5655_s4 + $0x128] ss:$12 sps:$4 sm:$0xff]  }
 0x975   : > { %v1923_v56 = vadd.f32 -0.28449672, %v1921_v55  ;;  %v4540_v55 = vld [vmem:[%s5655_s4 + $0x13c] ss:$12 sps:$4 sm:$0xff]  }
 0x976   : > { %v1924_v57 = vadd.f32 -0.28449672, %v1922_v48  ;;  %v4538_v48 = vld [vmem:[%s5655_s4 + $0x138] ss:$12 sps:$4 sm:$0xff]  }
 0x977   : > { %v1925_v59 = vmul.f32 %v4619_v35, %v1923_v56  ;;  %v4541_v56 = vld [vmem:[%s5655_s4 + $0x140] ss:$12 sps:$4 sm:$0xff]  }
 0x978   : > { %v1926_v60 = vmul.f32 %v4621_v38, %v1924_v57  ;;  %v4544_v57 = vld [vmem:[%s5655_s4 + $0x154] ss:$12 sps:$4 sm:$0xff]  }
 0x979   : > { %v1927_v61 = vadd.f32 0.2548296, %v1925_v59  ;;  %v4542_v59 = vld [vmem:[%s5655_s4 + $0x150] ss:$12 sps:$4 sm:$0xff]  }
 0x97a   : > { %v1928_v62 = vadd.f32 0.2548296, %v1926_v60  ;;  %v4545_v60 = vld [vmem:[%s5655_s4 + $0x158] ss:$12 sps:$4 sm:$0xff]  }
 0x97b   : > { %v1929_v0 = vmul.f32 %v4619_v35, %v1927_v61  ;;  %v4522_v35 = vld [vmem:[%s5655_s4 + $0xd8] ss:$12 sps:$4 sm:$0xff]  }
 0x97c   : > { %v1930_v2 = vmul.f32 %v4621_v38, %v1928_v62  ;;  %2341 = vmatpush1.bf16.msra.mxu1 %v4522_v35  ;;  %v4526_v38 = vld [vmem:[%s5655_s4 + $0xf0] ss:$12 sps:$4 sm:$0xff]   ;;  %v4548_v61 = vld [vmem:[%s5655_s4 + $0x16c] ss:$12 sps:$4 sm:$0xff]   ;;  %v4546_v62 = vld [vmem:[%s5655_s4 + $0x168] ss:$12 sps:$4 sm:$0xff]  }
 0x97d   : > { %v1939_v6 = vmul.f32 %v4623_v1, %v1929_v0  ;;  %2342 = vmatprep.subr.bf16.mxu1 %v4528_v36  ;;  %v4549_v0 = vld [vmem:[%s5655_s4 + $0x170] ss:$12 sps:$4 sm:$0xff]  }
 0x97e   : > { %v1940_v7 = vmul.f32 %v4625_v5, %v1930_v2 }
 0x97f   : > { %v1941_v8 = vsub.f32 1.0, %v1939_v6 }
 0x980   : > { %v1942_v9 = vsub.f32 1.0, %v1940_v7  ;;  %2343 = vmatpush1.bf16.msra.mxu1 %v4526_v38  ;;  %v3964_v7 = vld [vmem:[%s5665_s14] ss:$0 sm:$0xff] }
 0x981   : > { %v1945_v10 = vsub.f32 0.0, %v1941_v8  ;;  %2344 = vmatprep.subr.bf16.mxu1 %v4532_v50 }
 0x982   : > { %v1946_v11 = vsub.f32 0.0, %v1942_v9 }
 0x983   : > { %v1947_v12 = vsel %vm1943_vm4, %v1945_v10, %v1941_v8 }
 0x984   : > { %v1949_v15 = vadd.f32 1.0, %v1947_v12  ;;  %v1948_v16 = vsel %vm1944_vm5, %v1946_v11, %v1942_v9  ;;  %2345 = vmatpush1.bf16.msra.mxu1 %v4530_v51  ;;  %v3965_v9 = vld [vmem:[#allocation4] ss:$0 sm:$0xff] }
 0x985   : > { %v1950_v18 = vadd.f32 1.0, %v1948_v16  ;;  %2346 = vmatprep.subr.bf16.mxu1 %v4536_v53 }
 0x986   : > { %v1951_v19 = vmul.f32 %v1949_v15, %v1899_v14  ;;  %v5372_v14 = vld [vmem:[%s5656_s5 + $0x3] sm:$0x7] }
 0x987   : > { %v1952_v21 = vmul.f32 %v1950_v18, %v1900_v17  ;;  %v2202_v15 = vrot.slane %v5372_v14, %v5021_v43 }
 0x988   : > { %v1953_v26 = vpack.c.bf16 %v1951_v19, %v1951_v19  ;;  %2347 = vmatpush1.bf16.msra.mxu1 %v4534_v54 }
 0x989   : > { %v1954_v23 = vpack.c.bf16 %v1952_v21, %v1952_v21  ;;  %2348 = vmatprep.subr.bf16.mxu1 %v4540_v55  ;;  %v2198_v21 = vrot.slane %v5372_v14, %v5029_v45 }
 0x98b   : > { %2122 = vmatprep.mubr.bf16.mxu0 %v1954_v23 }
 0x98c   : > { %2123 = vmatmul.mubr.bf16.vlgmr.msra.gmra.mrb[16].mxu0 %v1953_v26  ;;  %2349 = vmatpush1.bf16.msra.mxu1 %v4538_v48 }
 0x98d   : > { %4331 = vmatprep.mubr.msk.bf16.mxu0 %vm4728_vm0, %v4726_v3  ;;  %4316 = vmatpush3.bf16.msra.mxu0 %v4521_v33 }
 0x98e   : > { %4317 = vmatprep.subr.bf16.mxu0 %v4726_v3  ;;  %2350 = vmatprep.subr.bf16.mxu1 %v4544_v57 }
 0x990   : > { %2351 = vmatpush1.bf16.msra.mxu1 %v4542_v59 }
 0x991   : > { %2352 = vmatprep.subr.bf16.mxu1 %v4548_v61 }
 0x994   : > { %2353 = vmatpush1.bf16.msra.mxu1 %v4546_v62 }
 0x995   : > { %4335 = vmatprep.subr.bf16.mxu1 %v4726_v3 }
 0xa5f   : > { %v4188_v28 = vpop.f32.mrb[16].mxu0 }
 0xa60   : > { %v4189_v27 = vpop.f32.mrb[17].mxu0 }
 0xa61   : > { %v4190_v20 = vadd.f32 %v4189_v27, %v4188_v28  ;;  %v4191_v29 = vpop.f32.mrb[18].mxu0 }
 0xa62   : > { %v4192_v39 = vpop.f32.mrb[19].mxu0 }
 0xa63   : > { %v2125_v22 = vadd.f32 %v4190_v20, %v3947_v24 }
 0xa65   : > { %v2130_v30 = vadd.f32 %v2125_v22, %v5212_v58  ;;  %v4525_v58 = vld [vmem:[%s5655_s4 + $0xe0] ss:$12 sps:$4 sm:$0xff]  }
 0xa66   : > { %4318 = vmatpush3.bf16.msra.mxu0 %v4525_v58 }
 0xa67   : > { %2133 = vadd.xlane.f32.xlu1 %v2130_v30  ;;  %4319 = vmatprep.subr.bf16.mxu0 %v4726_v3 }
 0xa6a   : > { %4320 = vmatpush3.bf16.msra.mxu0 %v4529_v49 }
 0xa6b   : > { %4321 = vmatprep.subr.bf16.mxu0 %v4726_v3 }
 0xa6e   : > { %4322 = vmatpush3.bf16.msra.mxu0 %v4533_v52 }
 0xa6f   : > { %4323 = vmatprep.subr.bf16.mxu0 %v4726_v3 }
 0xa72   : > { %4324 = vmatpush3.bf16.msra.mxu0 %v4537_v44 }
 0xa73   : > { %4325 = vmatprep.subr.bf16.mxu0 %v4726_v3 }
 0xa76   : > { %4326 = vmatpush3.bf16.msra.mxu0 %v4541_v56 }
 0xa77   : > { %4327 = vmatprep.subr.bf16.mxu0 %v4726_v3 }
 0xa7a   : > { %4328 = vmatpush3.bf16.msra.mxu0 %v4545_v60 }
 0xa7b   : > { %4329 = vmatprep.subr.bf16.mxu0 %v4726_v3 }
 0xa7e   : > { %4330 = vmatpush3.bf16.msra.mxu0 %v4549_v0 }
 0xa7f   : > { %4359 = vmatprep.subr.bf16.mxu0 %v4726_v3 }
 0xaf4   : > { %v2134_v40 = vpop.xlane.xlu1 %2133 }
 0xaf5   : > { %v2135_v41 = vmul.f32 0.0078125, %v2134_v40 }
 0xaf7   : > { %v2136_v46 = vsub.f32 %v2130_v30, %v2135_v41 }
 0xaf9   : > { %v2137_v47 = vmul.f32 %v2136_v46, %v2136_v46 }
 0xafb   : > { %2138 = vadd.xlane.f32.xlu1 %v2137_v47 }
 0xb88   : > { %v2139_v1 = vpop.xlane.xlu1 %2138 }
 0xb89   : > { %v2140_v2 = vmul.f32 0.0078125, %v2139_v1 }
 0xb8b   : > { %v2141_v5 = vadd.f32 1e-12, %v2140_v2 }
 0xb8d   : > { %4626 = vrsqrt.f32 %v2141_v5 }
 0xb97   : > { %v4627_v6 = vpop.eup %4626 }
 0xb98   : > { %v2143_v8 = vmul.f32 %v4627_v6, %v2136_v46 }
 0xb9a   : > { %v2150_v10 = vmul.f32 %v3964_v7, %v2143_v8 }
 0xb9c   : > { %v5361_v11 = vadd.f32 %v3965_v9, %v2150_v10 }
 0xb9e   : > { %v2158_v12 = vpack.c.bf16 %v5361_v11, %v5361_v11 }
 0xba0   : > { %2371 = vmatmul.mubr.bf16.vlgmr.msra.gmra.mrb[16].mxu1 %v2158_v12  ;;  %4332 = vmatmul.mubr.bf16.vlgmr.msra.gmra.mrb[20].mxu0 %v2158_v12 }
 0xba1   : > { %4337 = vmatprep.mubr.msk.bf16.mxu1 %vm4728_vm0, %v4726_v3  ;;  %4375 = vmatprep.mubr.msk.bf16.mxu0 %vm4728_vm0, %v4726_v3 }
 0xc73   : > { %v2372_v16 = vpop.f32.mrb[16].mxu1  ;;  %v5376_v17 = vpop.f32.mrb[20].mxu0 }
 0xc74   : > { %v2374_v18 = vpop.f32.mrb[17].mxu1  ;;  %v4333_v19 = vpop.f32.mrb[21].mxu0  ;;  %v2373_v20 = vadd.f32 %v2372_v16, %v2198_v21 }
 0xc75   : > { %v2375_v23 = vadd.f32 %v2374_v18, %v2202_v15  ;;  %v2376_v26 = vpop.f32.mrb[18].mxu1  ;;  %v2416_v28 = vpop.f32.mrb[22].mxu0 }
 0xc76   : > { %v2377_v24 = vpop.f32.mrb[19].mxu1  ;;  %v4334_v27 = vpop.f32.mrb[23].mxu0  ;;  %v2423_v35 = vcombine.high %v2373_v20, %v4726_v3  ;;  %v2430_v47 = vrot.slane %v2373_v20, %v5040_v63 }
 0xc77   : > { %2542 = vrot.lane.b32.xlu1 %v2375_v23, %s4729_s2  ;;  %v2545_v29 = vcombine.high %v2375_v23, %v4726_v3  ;;  %v2552_v22 = vrot.slane %v2375_v23, %v5040_v63 }
 0xc78   : > { %v2437_v44 = vrot.slane %v2423_v35, %v5040_v63 }
 0xc79   : > { %v2559_v32 = vrot.slane %v2545_v29, %v5040_v63 }
 0xc7b   : > { %2420 = vrot.lane.b32.xlu1 %v2373_v20, %s4729_s2 }
 0xce9   : > { %v2543_v39 = vpop.permute.xlu1 %2542 }
 0xcea   : > { %v2560_v30 = vcombine.high %v2543_v39, %v4726_v3  ;;  %v2567_v31 = vrot.slane %v2543_v39, %v5040_v63 }
 0xcec   : > { %v2574_v33 = vrot.slane %v2560_v30, %v5040_v63  ;;  %v2575_v34 = vcombine.low %v2552_v22, %v2567_v31  ;;  %v2576_v58 = vcombine.high %v2552_v22, %v2567_v31 }
 0xced   : > { %v2421_v36 = vpop.permute.xlu1 %2420 }
 0xcee   : > { %v2583_v38 = vrot.slane %v2575_v34, %v5044_v4  ;;  %v2590_v40 = vrot.slane %v2576_v58, %v5044_v4  ;;  %v2591_v41 = vcombine.low %v2559_v32, %v2574_v33  ;;  %v2592_v46 = vcombine.high %v2559_v32, %v2574_v33 }
 0xcef   : > { %v2438_v49 = vcombine.high %v2421_v36, %v4726_v3  ;;  %v2445_v50 = vrot.slane %v2421_v36, %v5040_v63 }
 0xcf0   : > { %v2599_v51 = vrot.slane %v2591_v41, %v5044_v4  ;;  %v2606_v52 = vrot.slane %v2592_v46, %v5044_v4  ;;  %v2611_v53 = vcombine.low %v2583_v38, %v2590_v40  ;;  %v4025_v54 = vcombine.high %v2583_v38, %v2590_v40 }
 0xcf1   : > { %v2452_v55 = vrot.slane %v2438_v49, %v5040_v63  ;;  %v2453_v48 = vcombine.low %v2430_v47, %v2445_v50  ;;  %v2454_v56 = vcombine.high %v2430_v47, %v2445_v50 }
 0xcf2   : > { %v2618_v57 = vrot.slane %v2611_v53, %v5040_v63  ;;  %v2626_v59 = vrot.slane %v4025_v54, %v5040_v63  ;;  %v2627_v60 = vcombine.low %v2599_v51, %v2606_v52  ;;  %v4026_v61 = vcombine.high %v2599_v51, %v2606_v52 }
 0xcf3   : > { %v2461_v62 = vrot.slane %v2453_v48, %v5044_v4  ;;  %v2468_v0 = vrot.slane %v2454_v56, %v5044_v4  ;;  %v2469_v1 = vcombine.low %v2437_v44, %v2452_v55  ;;  %v2470_v2 = vcombine.high %v2437_v44, %v2452_v55 }
 0xcf4   : > { %v2634_v5 = vrot.slane %v2627_v60, %v5040_v63  ;;  %v2642_v6 = vrot.slane %v4026_v61, %v5040_v63  ;;  %v2643_v7 = vcombine.low %v2618_v57, %v2626_v59  ;;  %v2206_v61 = vrot.slane %v5372_v14, %v691_v37 }
 0xcf5   : > { %v2477_v8 = vrot.slane %v2469_v1, %v5044_v4  ;;  %v2484_v9 = vrot.slane %v2470_v2, %v5044_v4  ;;  %v2489_v10 = vcombine.low %v2461_v62, %v2468_v0  ;;  %v4023_v12 = vcombine.high %v2461_v62, %v2468_v0 }
 0xcf6   : > { %v2651_v15 = vcombine.low %v2634_v5, %v2642_v6  ;;  %v2650_v23 = vrot.slane %v2643_v7, %v5044_v4 }
 0xcf7   : > { %v2496_v16 = vrot.slane %v2489_v10, %v5040_v63  ;;  %v2504_v18 = vrot.slane %v4023_v12, %v5040_v63  ;;  %v2505_v19 = vcombine.low %v2477_v8, %v2484_v9  ;;  %v4024_v21 = vcombine.high %v2477_v8, %v2484_v9 }
 0xcf8   : > { %v2658_v26 = vrot.slane %v2651_v15, %v5044_v4 }
 0xcf9   : > { %v2512_v28 = vrot.slane %v2505_v19, %v5040_v63  ;;  %v2520_v24 = vrot.slane %v4024_v21, %v5040_v63  ;;  %v2521_v27 = vcombine.low %v2496_v16, %v2504_v18 }
 0xcfa   : > { %v2659_v20 = vcombine.low %v2650_v23, %v2658_v26  ;;  %v2660_v32 = vcombine.high %v2650_v23, %v2658_v26 }
 0xcfb   : > { %v2529_v29 = vcombine.low %v2512_v28, %v2520_v24  ;;  %v2528_v30 = vrot.slane %v2521_v27, %v5044_v4 }
 0xcfc   : > { %v2661_v39 = vpack.c.bf16 %v2659_v20, %v2659_v20  ;;  %v2662_v34 = vpack.c.bf16 %v2660_v32, %v2660_v32 }
 0xcfd   : > { %v2536_v22 = vrot.slane %v2529_v29, %v5044_v4 }
 0xcfe   : > { %v2789_v31 = vsel %vm1277_vm1, %v2661_v39, 0  ;;  %v2835_v35 = vsel %vm1277_vm1, %v2662_v34, 0 }
 0xcff   : > { %4336 = vmatpush3.bf16.xpose.msra.mxu1 %v2789_v31  ;;  %v2537_v33 = vcombine.low %v2528_v30, %v2536_v22  ;;  %v2538_v36 = vcombine.high %v2528_v30, %v2536_v22 }
 0xd00   : > { %4341 = vmatprep.subr.bf16.mxu1 %v4726_v3 }
 0xd01   : > { %v2539_v58 = vpack.c.bf16 %v2537_v33, %v2537_v33  ;;  %v2540_v38 = vpack.c.bf16 %v2538_v36, %v2538_v36 }
 0xd06   : > { %4338 = vmatmul.mubr.msk.bf16.vlgmr.msra.gmra.mrb[20].mxu1 %vm1277_vm1, %v2539_v58 }
 0xd07   : > { %4342 = vmatpush3.bf16.xpose.msra.mxu1 %v2835_v35  ;;  %4343 = vmatprep.mubr.msk.bf16.mxu1 %vm4728_vm0, %v4726_v3 }
 0xd08   : > { %4347 = vmatprep.subr.bf16.mxu1 %v4726_v3 }
 0xd0e   : > { %4344 = vmatmul.mubr.msk.bf16.vlgmr.msra.gmra.mrb[24].mxu1 %vm1277_vm1, %v2540_v38 }
 0xd0f   : > { %4349 = vmatprep.mubr.msk.bf16.mxu1 %vm4728_vm0, %v4726_v3 }
 0xdd9   : > { %v2825_v40 = vpop.f32.mrb[20].mxu1 }
 0xdda   : > { %v2826_v41 = vadd.f32 %v5091_v13, %v2825_v40  ;;  %v4339_v46 = vpop.f32.mrb[21].mxu1 }
 0xddb   : > { %v2828_v47 = vpop.f32.mrb[22].mxu1 }
 0xddc   : > { %v4340_v49 = vpop.f32.mrb[23].mxu1  ;;  %v2877_v50 = vsel %vm1370_vm2, %v2826_v41, -inf }
 0xddd   : > { %2878 = vmax.xlane.f32.xlu0 %v2877_v50 }
 0xde1   : > { %v2871_v51 = vpop.f32.mrb[24].mxu1 }
 0xde2   : > { %v2872_v52 = vadd.f32 %v5091_v13, %v2871_v51  ;;  %v4345_v53 = vpop.f32.mrb[25].mxu1  ;;  %v2414_v13 = vadd.f32 %v5376_v17, %v2206_v61 }
 0xde3   : > { %v2874_v54 = vpop.f32.mrb[26].mxu1  ;;  %v4550_v53 = vld [vmem:[#allocation2 + $0x40] sm:$0xff]  }
 0xde4   : > { %v4346_v44 = vpop.f32.mrb[27].mxu1  ;;  %v2880_v55 = vsel %vm1370_vm2, %v2872_v52, -inf  ;;  %v2667_v7 = vcombine.high %v2414_v13, %v4726_v3  ;;  %v2674_v42 = vrot.slane %v2414_v13, %v5040_v63  ;;  %4360 = vmatpush3.bf16.msra.mxu0 %v4550_v53  ;;  %v4551_v54 = vld [vmem:[#allocation2 + $0x48] sm:$0xff]  }
 0xde5   : > { %2881 = vmax.xlane.f32.xlu1 %v2880_v55  ;;  %4361 = vmatprep.subr.bf16.mxu0 %v4726_v3  ;;  %v4552_v44 = vld [vmem:[#allocation2 + $0x50] sm:$0xff]   ;;  %v4553_v55 = vld [vmem:[#allocation2 + $0x58] sm:$0xff]  }
 0xde6   : > { %v2681_v17 = vrot.slane %v2667_v7, %v5040_v63 }
 0xde8   : > { %4362 = vmatpush3.bf16.msra.mxu0 %v4551_v54 }
 0xde9   : > { %4363 = vmatprep.subr.bf16.mxu0 %v4726_v3 }
 0xdec   : > { %4364 = vmatpush3.bf16.msra.mxu0 %v4552_v44 }
 0xded   : > { %4365 = vmatprep.subr.bf16.mxu0 %v4726_v3 }
 0xdf0   : > { %4366 = vmatpush3.bf16.msra.mxu0 %v4553_v55  ;;  %v4569_v55 = vld [vmem:[%s5661_s10 + $0xb4] ss:$8 sps:$4 sm:$0xff]  }
 0xdf1   : > { %4367 = vmatprep.subr.bf16.mxu0 %v4726_v3 }
 0xe6a   : > { %v2879_v48 = vpop.xlane.xlu0 %2878 }
 0xe6b   : > { %v2883_v56 = vsub.f32 %v2826_v41, %v2879_v48  ;;  %v4554_v48 = vld [vmem:[#allocation2 + $0x60] sm:$0xff]  }
 0xe6c   : > { %4368 = vmatpush3.bf16.msra.mxu0 %v4554_v48  ;;  %v4567_v48 = vld [vmem:[%s5661_s10 + $0xb0] ss:$8 sps:$4 sm:$0xff]  }
 0xe6d   : > { %v2885_v57 = vmul.f32 1.442695, %v2883_v56  ;;  %v4555_v56 = vld [vmem:[#allocation2 + $0x68] sm:$0xff]   ;;  %4369 = vmatprep.subr.bf16.mxu0 %v4726_v3 }
 0xe6f   : > { %4628 = vpow2.f32 %v2885_v57 }
 0xe70   : > { %4370 = vmatpush3.bf16.msra.mxu0 %v4555_v56  ;;  %v4572_v56 = vld [vmem:[%s5661_s10 + $0xc4] ss:$8 sps:$4 sm:$0xff]  }
 0xe71   : > { %4371 = vmatprep.subr.bf16.mxu0 %v4726_v3 }
 0xe72   : > { %v2882_v62 = vpop.xlane.xlu1 %2881 }
 0xe73   : > { %v2884_v0 = vsub.f32 %v2872_v52, %v2882_v62 }
 0xe75   : > { %v2887_v1 = vmul.f32 1.442695, %v2884_v0 }
 0xe77   : > { %4630 = vpow2.f32 %v2887_v1 }
 0xe79   : > { %v4629_v59 = vpop.eup %4628 }
 0xe7a   : > { %v2889_v60 = vsel %vm1370_vm2, %v4629_v59, 0.0 }
 0xe7b   : > { %2890 = vadd.xlane.f32.xlu0 %v2889_v60 }
 0xe81   : > { %v4631_v2 = vpop.eup %4630 }
 0xe82   : > { %v2892_v5 = vsel %vm1370_vm2, %v4631_v2, 0.0 }
 0xe91   : > { %2664 = vrot.lane.b32.xlu0 %v2414_v13, %s4729_s2 }
 0xeb0   : > { %2893 = vadd.xlane.f32.xlu0 %v2892_v5 }
 0xf08   : > { %v2891_v6 = vpop.xlane.xlu0 %2890 }
 0xf09   : > { %4632 = vrcp.f32 %v2891_v6 }
 0xf0c   : > { %v2665_v8 = vpop.permute.xlu0 %2664 }
 0xf0d   : > { %v2682_v37 = vcombine.high %v2665_v8, %v4726_v3  ;;  %v2689_v14 = vrot.slane %v2665_v8, %v5040_v63 }
 0xf0f   : > { %v2696_v9 = vrot.slane %v2682_v37, %v5040_v63  ;;  %v2697_v10 = vcombine.low %v2674_v42, %v2689_v14  ;;  %v2698_v12 = vcombine.high %v2674_v42, %v2689_v14 }
 0xf11   : > { %v2705_v15 = vrot.slane %v2697_v10, %v5044_v4  ;;  %v2712_v16 = vrot.slane %v2698_v12, %v5044_v4  ;;  %v2713_v18 = vcombine.low %v2681_v17, %v2696_v9  ;;  %v2714_v19 = vcombine.high %v2681_v17, %v2696_v9 }
 0xf13   : > { %v2721_v21 = vrot.slane %v2713_v18, %v5044_v4  ;;  %v2728_v23 = vrot.slane %v2714_v19, %v5044_v4  ;;  %v2733_v26 = vcombine.low %v2705_v15, %v2712_v16  ;;  %v4027_v28 = vcombine.high %v2705_v15, %v2712_v16  ;;  %v4633_v34 = vpop.eup %4632  ;;  %v4557_v15 = vld [vmem:[#allocation2 + $0x78] sm:$0xff]  }
 0xf14   : > { %v2897_v36 = vmul.f32 %v4633_v34, %v4629_v59 }
 0xf15   : > { %v2740_v24 = vrot.slane %v2733_v26, %v5040_v63  ;;  %v2748_v27 = vrot.slane %v4027_v28, %v5040_v63  ;;  %v2749_v20 = vcombine.low %v2721_v21, %v2728_v23  ;;  %v4028_v29 = vcombine.high %v2721_v21, %v2728_v23 }
 0xf16   : > { %v2899_v46 = vpack.c.bf16 %v2897_v36, %v2897_v36 }
 0xf17   : > { %v2756_v39 = vrot.slane %v2749_v20, %v5040_v63  ;;  %v2764_v22 = vrot.slane %v4028_v29, %v5040_v63  ;;  %v2765_v30 = vcombine.low %v2740_v24, %v2748_v27 }
 0xf19   : > { %v2773_v31 = vcombine.low %v2756_v39, %v2764_v22  ;;  %v2772_v32 = vrot.slane %v2765_v30, %v5044_v4 }
 0xf1b   : > { %v2780_v33 = vrot.slane %v2773_v31, %v5044_v4 }
 0xf1d   : > { %v2781_v58 = vcombine.low %v2772_v32, %v2780_v33  ;;  %v2782_v35 = vcombine.high %v2772_v32, %v2780_v33 }
 0xf1f   : > { %v2783_v38 = vpack.c.bf16 %v2781_v58, %v2781_v58  ;;  %v2784_v41 = vpack.c.bf16 %v2782_v35, %v2782_v35  ;;  %v4036_v35 = vld [vmem:[%s5658_s7 + $0x1] ss:$0 sm:$0xff] }
 0xf21   : > { %v2905_v40 = vsel %vm1398_vm3, %v2783_v38, 0  ;;  %v2951_v47 = vsel %vm1398_vm3, %v2784_v41, 0 }
 0xf22   : > { %4348 = vmatpush3.bf16.msra.mxu1 %v2905_v40 }
 0xf23   : > { %4353 = vmatprep.subr.bf16.mxu1 %v4726_v3 }
 0xf25   : > { %4350 = vmatmul.mubr.msk.bf16.vlgmr.msra.gmra.mrb[28].mxu1 %vm1370_vm2, %v2899_v46  ;;  %v4558_v46 = vld [vmem:[%s5661_s10 + $0x80] ss:$8 sps:$4 sm:$0xff]  }
 0xf26   : > { %4354 = vmatpush3.bf16.msra.mxu1 %v2951_v47  ;;  %4355 = vmatprep.mubr.msk.bf16.mxu1 %vm4728_vm0, %v4726_v3  ;;  %v4560_v47 = vld [vmem:[%s5661_s10 + $0x84] ss:$8 sps:$4 sm:$0xff]  }
 0xf27   : > { %3369 = vmatprep.subr.bf16.mxu1 %v4560_v47 }
 0xf3d   : > { %v2894_v49 = vpop.xlane.xlu0 %2893 }
 0xf3e   : > { %4634 = vrcp.f32 %v2894_v49  ;;  %v4563_v49 = vld [vmem:[%s5661_s10 + $0x94] ss:$8 sps:$4 sm:$0xff]  }
 0xf48   : > { %v4635_v50 = vpop.eup %4634 }
 0xf49   : > { %v2898_v51 = vmul.f32 %v4635_v50, %v4631_v2  ;;  %v4561_v50 = vld [vmem:[%s5661_s10 + $0x90] ss:$8 sps:$4 sm:$0xff]  }
 0xf4b   : > { %v2900_v52 = vpack.c.bf16 %v2898_v51, %v2898_v51  ;;  %v4564_v51 = vld [vmem:[%s5661_s10 + $0xa0] ss:$8 sps:$4 sm:$0xff]  }
 0xf4d   : > { %4356 = vmatmul.mubr.msk.bf16.vlgmr.msra.gmra.mrb[32].mxu1 %vm1370_vm2, %v2900_v52 }
 0xf4e   : > { %3401 = vmatprep.mubr.bf16.mxu1 %v4727_v25  ;;  %v4556_v25 = vld [vmem:[#allocation2 + $0x70] sm:$0xff]   ;;  %3370 = vmatpush1.bf16.msra.mxu1 %v4558_v46 }
 0xf4f   : > { %4372 = vmatpush3.bf16.msra.mxu0 %v4556_v25  ;;  %3371 = vmatprep.subr.bf16.mxu1 %v4563_v49  ;;  %v4570_v25 = vld [vmem:[%s5661_s10 + $0xc0] ss:$8 sps:$4 sm:$0xff]  }
 0xf50   : > { %4373 = vmatprep.subr.bf16.mxu0 %v4726_v3 }
 0xf52   : > { %3372 = vmatpush1.bf16.msra.mxu1 %v4561_v50 }
 0xf53   : > { %4374 = vmatpush3.bf16.msra.mxu0 %v4557_v15  ;;  %v4586_v15 = vld [vmem:[%s5663_s12 + $0xd0] sm:$0xff]  }
 0xff8   : > { %v2941_v57 = vpop.f32.mrb[28].mxu1 }
 0xff9   : > { %v4351_v59 = vpop.f32.mrb[29].mxu1  ;;  %v2993_v13 = vcombine.high %v2941_v57, %v4726_v3  ;;  %v3000_v0 = vrot.slane %v2941_v57, %v5040_v63  ;;  %v4575_v57 = vld [vmem:[%s5661_s10 + $0xd4] ss:$8 sps:$4 sm:$0xff]  }
 0xffa   : > { %v2944_v60 = vpop.f32.mrb[30].mxu1  ;;  %v4573_v59 = vld [vmem:[%s5661_s10 + $0xd0] ss:$8 sps:$4 sm:$0xff]  }
 0xffb   : > { %v4352_v61 = vpop.f32.mrb[31].mxu1  ;;  %v3007_v7 = vrot.slane %v2993_v13, %v5040_v63  ;;  %v4578_v60 = vld [vmem:[%s5661_s10 + $0xe4] ss:$8 sps:$4 sm:$0xff]   ;;  %v4581_v13 = vld [vmem:[%s5661_s10 + $0xf4] ss:$8 sps:$4 sm:$0xff]  }
 0xffc   : > { %v4576_v61 = vld [vmem:[%s5661_s10 + $0xe0] ss:$8 sps:$4 sm:$0xff]  }
0x1020   : > { %v2987_v62 = vpop.f32.mrb[32].mxu1 }
0x1021   : > { %v3008_v1 = vcombine.high %v2987_v62, %v4726_v3  ;;  %v3015_v2 = vrot.slane %v2987_v62, %v5040_v63  ;;  %v4357_v5 = vpop.f32.mrb[33].mxu1  ;;  %v4579_v62 = vld [vmem:[%s5661_s10 + $0xf0] ss:$8 sps:$4 sm:$0xff]  }
0x1022   : > { %v2990_v6 = vpop.f32.mrb[34].mxu1 }
0x1023   : > { %v3022_v8 = vrot.slane %v3008_v1, %v5040_v63  ;;  %v3023_v42 = vcombine.low %v3000_v0, %v3015_v2  ;;  %v3024_v37 = vcombine.high %v3000_v0, %v3015_v2  ;;  %v4358_v14 = vpop.f32.mrb[35].mxu1  ;;  %v4047_v6 = vld [vmem:[%s5659_s8 + $0x1] ss:$0 sm:$0xff] }
0x1025   : > { %v3031_v17 = vrot.slane %v3023_v42, %v5044_v4  ;;  %v3038_v9 = vrot.slane %v3024_v37, %v5044_v4  ;;  %v3039_v10 = vcombine.low %v3007_v7, %v3022_v8  ;;  %v3040_v12 = vcombine.high %v3007_v7, %v3022_v8  ;;  %v4048_v8 = vld [vmem:[%s5660_s9 + $0x1] ss:$0 sm:$0xff] }
0x1027   : > { %v3047_v16 = vrot.slane %v3039_v10, %v5044_v4  ;;  %v3054_v18 = vrot.slane %v3040_v12, %v5044_v4  ;;  %v3059_v19 = vcombine.low %v3031_v17, %v3038_v9  ;;  %v4033_v21 = vcombine.high %v3031_v17, %v3038_v9  ;;  %v4582_v17 = vld [vmem:[%s5663_s12 + $0xc0] sm:$0xff]   ;;  %v4584_v10 = vld [vmem:[%s5663_s12 + $0xc8] sm:$0xff]  }
0x1028   : > { %v4583_v9 = vld [vmem:[%s5663_s12 + $0x80] sm:$0xff]   ;;  %4220 = vmatprep.subr.bf16.mxu0 %v4582_v17  ;;  %v4585_v12 = vld [vmem:[%s5663_s12 + $0x88] sm:$0xff]  }
0x1029   : > { %v3066_v23 = vrot.slane %v3059_v19, %v5040_v63  ;;  %v3074_v26 = vrot.slane %v4033_v21, %v5040_v63  ;;  %v3075_v28 = vcombine.low %v3047_v16, %v3054_v18  ;;  %v4034_v24 = vcombine.high %v3047_v16, %v3054_v18  ;;  %v4587_v16 = vld [vmem:[%s5663_s12 + $0x90] sm:$0xff]   ;;  %v4588_v18 = vld [vmem:[%s5663_s12 + $0xd8] sm:$0xff]   ;;  %v4590_v21 = vld [vmem:[%s5663_s12 + $0xe0] sm:$0xff]  }
0x102a   : > { %v4589_v19 = vld [vmem:[%s5663_s12 + $0x98] sm:$0xff]  }
0x102b   : > { %v3082_v27 = vrot.slane %v3075_v28, %v5040_v63  ;;  %v3090_v20 = vrot.slane %v4034_v24, %v5040_v63  ;;  %v3091_v29 = vcombine.low %v3066_v23, %v3074_v26  ;;  %v4591_v23 = vld [vmem:[%s5663_s12 + $0xa0] sm:$0xff]   ;;  %v4592_v26 = vld [vmem:[%s5663_s12 + $0xe8] sm:$0xff]   ;;  %v4594_v24 = vld [vmem:[%s5663_s12 + $0xf0] sm:$0xff]  }
0x102c   : > { %v4593_v28 = vld [vmem:[%s5663_s12 + $0xa8] sm:$0xff]  }
0x102d   : > { %v3099_v39 = vcombine.low %v3082_v27, %v3090_v20  ;;  %v3098_v22 = vrot.slane %v3091_v29, %v5044_v4  ;;  %v4595_v27 = vld [vmem:[%s5663_s12 + $0xb0] sm:$0xff]   ;;  %v4596_v20 = vld [vmem:[%s5663_s12 + $0xf8] sm:$0xff]  }
0x102e   : > { %v4597_v29 = vld [vmem:[%s5663_s12 + $0xb8] sm:$0xff]  }
0x102f   : > { %v3106_v30 = vrot.slane %v3099_v39, %v5044_v4  ;;  %v4065_v39 = vld [vmem:[%s5662_s11 + $0x2] sm:$0x3] }
0x1031   : > { %v3108_v31 = vcombine.high %v3098_v22, %v3106_v30  ;;  %v3107_v32 = vcombine.low %v3098_v22, %v3106_v30  ;;  %v3282_v22 = vrot.slane %v4065_v39, %v5029_v45  ;;  %v3286_v30 = vrot.slane %v4065_v39, %v5021_v43  ;;  %v4115_v39 = vld [vmem:[%s5664_s13 + $0x1] ss:$0 sm:$0xff] }
0x1033   : > { %3110 = vrot.lane.b32.xlu1 %v3108_v31, %s4729_s2 }
0x10a5   : > { %v3111_v33 = vpop.permute.xlu1 %3110 }
0x10a6   : > { %v3113_v34 = vsel %vm1277_vm1, %v3107_v32, %v3111_v33 }
0x10a7   : > { %v3114_v58 = vpack.c.bf16 %v3113_v34, %v3113_v34 }
0x10a9   : > { %4376 = vmatmul.mubr.bf16.vlgmr.msra.gmra.mrb[24].mxu0 %v3114_v58 }
0x10aa   : > { %4221 = vmatpush3.bf16.msra.mxu0 %v4583_v9 }
0x10ab   : > { %4222 = vmatprep.subr.bf16.mxu0 %v4584_v10 }
0x10ae   : > { %4223 = vmatpush3.bf16.msra.mxu0 %v4585_v12 }
0x10af   : > { %4224 = vmatprep.subr.bf16.mxu0 %v4586_v15 }
0x10b2   : > { %4225 = vmatpush3.bf16.msra.mxu0 %v4587_v16 }
0x10b3   : > { %4226 = vmatprep.subr.bf16.mxu0 %v4588_v18 }
0x10b6   : > { %4227 = vmatpush3.bf16.msra.mxu0 %v4589_v19 }
0x10b7   : > { %4228 = vmatprep.subr.bf16.mxu0 %v4590_v21 }
0x10ba   : > { %4229 = vmatpush3.bf16.msra.mxu0 %v4591_v23 }
0x10bb   : > { %4230 = vmatprep.subr.bf16.mxu0 %v4592_v26 }
0x10be   : > { %4231 = vmatpush3.bf16.msra.mxu0 %v4593_v28 }
0x10bf   : > { %4232 = vmatprep.subr.bf16.mxu0 %v4594_v24 }
0x10c2   : > { %4233 = vmatpush3.bf16.msra.mxu0 %v4595_v27 }
0x10c3   : > { %4234 = vmatprep.subr.bf16.mxu0 %v4596_v20 }
0x10c6   : > { %4235 = vmatpush3.bf16.msra.mxu0 %v4597_v29 }
0x117c   : > { %v3222_v63 = vpop.f32.mrb[24].mxu0 }
0x117d   : > { %v3223_v36 = vadd.f32 %v4036_v35, %v3222_v63  ;;  %v4377_v38 = vpop.f32.mrb[25].mxu0 }
0x117e   : > { %v3225_v40 = vpop.f32.mrb[26].mxu0 }
0x117f   : > { %v4378_v41 = vpop.f32.mrb[27].mxu0  ;;  %v3228_v4 = vadd.f32 %v3223_v36, %v5361_v11  ;;  %v4566_v11 = vld [vmem:[%s5661_s10 + $0xa4] ss:$8 sps:$4 sm:$0xff]  }
0x1180   : > { %3373 = vmatprep.subr.bf16.mxu1 %v4566_v11 }
0x1181   : > { %3233 = vadd.xlane.f32.xlu1 %v3228_v4  ;;  %3374 = vmatpush1.bf16.msra.mxu1 %v4564_v51 }
0x1182   : > { %3375 = vmatprep.subr.bf16.mxu1 %v4569_v55 }
0x1185   : > { %3376 = vmatpush1.bf16.msra.mxu1 %v4567_v48 }
0x1186   : > { %3377 = vmatprep.subr.bf16.mxu1 %v4572_v56 }
0x1189   : > { %3378 = vmatpush1.bf16.msra.mxu1 %v4570_v25 }
0x118a   : > { %3379 = vmatprep.subr.bf16.mxu1 %v4575_v57 }
0x118d   : > { %3380 = vmatpush1.bf16.msra.mxu1 %v4573_v59 }
0x118e   : > { %3381 = vmatprep.subr.bf16.mxu1 %v4578_v60 }
0x1191   : > { %3382 = vmatpush1.bf16.msra.mxu1 %v4576_v61 }
0x1192   : > { %3383 = vmatprep.subr.bf16.mxu1 %v4581_v13 }
0x1195   : > { %3384 = vmatpush1.bf16.msra.mxu1 %v4579_v62 }
0x1196   : > { %4379 = vmatprep.subr.bf16.mxu1 %v4726_v3 }
0x120e   : > { %v3234_v52 = vpop.xlane.xlu1 %3233 }
0x120f   : > { %v3235_v53 = vmul.f32 0.0078125, %v3234_v52 }
0x1211   : > { %v3236_v54 = vsub.f32 %v3228_v4, %v3235_v53 }
0x1213   : > { %v3237_v44 = vmul.f32 %v3236_v54, %v3236_v54 }
0x1215   : > { %3238 = vadd.xlane.f32.xlu0 %v3237_v44 }
0x12a2   : > { %v3239_v0 = vpop.xlane.xlu0 %3238 }
0x12a3   : > { %v3240_v1 = vmul.f32 0.0078125, %v3239_v0 }
0x12a5   : > { %v3241_v2 = vadd.f32 1e-12, %v3240_v1 }
0x12a7   : > { %4636 = vrsqrt.f32 %v3241_v2 }
0x12b1   : > { %v4637_v5 = vpop.eup %4636 }
0x12b2   : > { %v3243_v7 = vmul.f32 %v4637_v5, %v3236_v54 }
0x12b4   : > { %v3250_v42 = vmul.f32 %v4047_v6, %v3243_v7 }
0x12b6   : > { %v5543_v37 = vadd.f32 %v4048_v8, %v3250_v42 }
0x12b8   : > { %v3258_v14 = vpack.c.bf16 %v5543_v37, %v5543_v37 }
0x12ba   : > { %3402 = vmatmul.mubr.bf16.vlgmr.msra.gmra.mrb[36].mxu1 %v3258_v14 }
0x12bb   : > { %4395 = vmatprep.mubr.msk.bf16.mxu1 %vm4728_vm0, %v4726_v3 }
0x138d   : > { %v3403_v31 = vpop.f32.mrb[36].mxu1 }
0x138e   : > { %v3404_v32 = vadd.f32 %v3403_v31, %v3282_v22  ;;  %v3405_v33 = vpop.f32.mrb[37].mxu1 }
0x138f   : > { %v3406_v34 = vadd.f32 %v3405_v33, %v3286_v30  ;;  %v3407_v58 = vpop.f32.mrb[38].mxu1 }
0x1390   : > { %v3412_v35 = vmul.f32 0.70710677, %v3404_v32  ;;  %v3408_v63 = vpop.f32.mrb[39].mxu1  ;;  %v3410_v18 = vmul.f32 0.5, %v3404_v32 }
0x1391   : > { %v3413_v36 = vmul.f32 0.70710677, %v3406_v34  ;;  %v3411_v23 = vmul.f32 0.5, %v3406_v34  ;;  %v4598_v34 = vld [vmem:[%s5667_s16] sm:$0xff]  }
0x1392   : > { %v3414_v38 = vand.u32 2147483647, %v3412_v35  ;;  %vm3454_vm6 = vcmp.lt.f32.partialorder %v3412_v35, 0.0  ;;  %4380 = vmatpush3.bf16.msra.mxu1 %v4598_v34  ;;  %v4599_v35 = vld [vmem:[%s5667_s16 + $0x8] sm:$0xff]  }
0x1393   : > { %v3415_v40 = vand.u32 2147483647, %v3413_v36  ;;  %vm3455_vm7 = vcmp.lt.f32.partialorder %v3413_v36, 0.0  ;;  %4381 = vmatprep.subr.bf16.mxu1 %v4726_v3 }
0x1394   : > { %v3416_v41 = vmul.f32 0.3275911, %v3414_v38  ;;  %v3442_v49 = vsub.f32 0.0, %v3414_v38 }
0x1395   : > { %v3417_v4 = vmul.f32 0.3275911, %v3415_v40  ;;  %v3443_v45 = vsub.f32 0.0, %v3415_v40 }
0x1396   : > { %v3418_v46 = vadd.f32 1.0, %v3416_v41  ;;  %v3444_v43 = vmul.f32 %v3442_v49, %v3414_v38  ;;  %4382 = vmatpush3.bf16.msra.mxu1 %v4599_v35  ;;  %v4601_v41 = vld [vmem:[%s5667_s16 + $0x18] sm:$0xff]  }
0x1397   : > { %v3419_v47 = vadd.f32 1.0, %v3417_v4  ;;  %v3445_v52 = vmul.f32 %v3443_v45, %v3415_v40  ;;  %4383 = vmatprep.subr.bf16.mxu1 %v4726_v3  ;;  %v4602_v4 = vld [vmem:[%s5667_s16 + $0x20] sm:$0xff]   ;;  %v4605_v49 = vld [vmem:[%s5667_s16 + $0x38] sm:$0xff]  }
0x1398   : > { %4638 = vrcp.f32 %v3418_v46  ;;  %v3446_v44 = vmul.f32 1.442695, %v3444_v43  ;;  %v4603_v46 = vld [vmem:[%s5667_s16 + $0x28] sm:$0xff]  }
0x1399   : > { %4640 = vrcp.f32 %v3419_v47  ;;  %v3448_v56 = vmul.f32 1.442695, %v3445_v52  ;;  %v4604_v47 = vld [vmem:[%s5667_s16 + $0x30] sm:$0xff]  }
0x139a   : > { %4642 = vpow2.f32 %v3446_v44 }
0x139b   : > { %4644 = vpow2.f32 %v3448_v56 }
0x13a2   : > { %v4639_v50 = vpop.eup %4638 }
0x13a3   : > { %v4641_v11 = vpop.eup %4640  ;;  %v3424_v51 = vmul.f32 1.0614054, %v4639_v50 }
0x13a4   : > { %v3425_v53 = vmul.f32 1.0614054, %v4641_v11  ;;  %v4643_v7 = vpop.eup %4642 }
0x13a5   : > { %v3426_v54 = vadd.f32 -1.4531521, %v3424_v51  ;;  %v4645_v42 = vpop.eup %4644  ;;  %v4133_v51 = vld [vmem:[%s5665_s14 + $0x1] ss:$0 sm:$0xff] }
0x13a6   : > { %v3427_v55 = vadd.f32 -1.4531521, %v3425_v53  ;;  %v4134_v53 = vld [vmem:[#allocation4 + $0x1] ss:$0 sm:$0xff] }
0x13a7   : > { %v3428_v48 = vmul.f32 %v4639_v50, %v3426_v54 }
0x13a8   : > { %v3429_v25 = vmul.f32 %v4641_v11, %v3427_v55 }
0x13a9   : > { %v3430_v57 = vadd.f32 1.4214138, %v3428_v48 }
0x13aa   : > { %v3431_v59 = vadd.f32 1.4214138, %v3429_v25 }
0x13ab   : > { %v3432_v60 = vmul.f32 %v4639_v50, %v3430_v57 }
0x13ac   : > { %v3433_v61 = vmul.f32 %v4641_v11, %v3431_v59 }
0x13ad   : > { %v3434_v13 = vadd.f32 -0.28449672, %v3432_v60 }
0x13ae   : > { %v3435_v62 = vadd.f32 -0.28449672, %v3433_v61 }
0x13af   : > { %v3436_v0 = vmul.f32 %v4639_v50, %v3434_v13 }
0x13b0   : > { %v3437_v1 = vmul.f32 %v4641_v11, %v3435_v62 }
0x13b1   : > { %v3438_v2 = vadd.f32 0.2548296, %v3436_v0 }
0x13b2   : > { %v3439_v5 = vadd.f32 0.2548296, %v3437_v1 }
0x13b3   : > { %v3440_v6 = vmul.f32 %v4639_v50, %v3438_v2 }
0x13b4   : > { %v3441_v8 = vmul.f32 %v4641_v11, %v3439_v5 }
0x13b5   : > { %v3450_v14 = vmul.f32 %v4643_v7, %v3440_v6 }
0x13b6   : > { %v3451_v17 = vmul.f32 %v4645_v42, %v3441_v8 }
0x13b7   : > { %v3452_v9 = vsub.f32 1.0, %v3450_v14 }
0x13b8   : > { %v3453_v10 = vsub.f32 1.0, %v3451_v17 }
0x13b9   : > { %v3456_v12 = vsub.f32 0.0, %v3452_v9 }
0x13ba   : > { %v3457_v15 = vsub.f32 0.0, %v3453_v10 }
0x13bb   : > { %v3458_v16 = vsel %vm3454_vm6, %v3456_v12, %v3452_v9 }
0x13bc   : > { %v3460_v19 = vadd.f32 1.0, %v3458_v16  ;;  %v3459_v21 = vsel %vm3455_vm7, %v3457_v15, %v3453_v10 }
0x13bd   : > { %v3461_v26 = vadd.f32 1.0, %v3459_v21 }
0x13be   : > { %v3462_v28 = vmul.f32 %v3460_v19, %v3410_v18 }
0x13bf   : > { %v3463_v24 = vmul.f32 %v3461_v26, %v3411_v23 }
0x13c0   : > { %v3464_v20 = vpack.c.bf16 %v3462_v28, %v3462_v28 }
0x13c1   : > { %v3465_v27 = vpack.c.bf16 %v3463_v24, %v3463_v24 }
0x13c3   : > { %3635 = vmatprep.mubr.bf16.mxu0 %v3465_v27 }
0x13c4   : > { %3636 = vmatmul.mubr.bf16.vlgmr.msra.gmra.mrb[28].mxu0 %v3464_v20 }
0x1497   : > { %v4236_v29 = vpop.f32.mrb[28].mxu0 }
0x1498   : > { %v4237_v22 = vpop.f32.mrb[29].mxu0 }
0x1499   : > { %v4238_v30 = vadd.f32 %v4237_v22, %v4236_v29  ;;  %v4239_v31 = vpop.f32.mrb[30].mxu0 }
0x149a   : > { %v4240_v33 = vpop.f32.mrb[31].mxu0 }
0x149b   : > { %v3638_v32 = vadd.f32 %v4238_v30, %v4115_v39 }
0x149d   : > { %v3643_v58 = vadd.f32 %v3638_v32, %v5543_v37  ;;  %v4600_v37 = vld [vmem:[%s5667_s16 + $0x10] sm:$0xff]  }
0x149e   : > { %4384 = vmatpush3.bf16.msra.mxu1 %v4600_v37 }
0x149f   : > { %3648 = vadd.xlane.f32.xlu0 %v3643_v58  ;;  %4385 = vmatprep.subr.bf16.mxu1 %v4726_v3 }
0x14a2   : > { %4386 = vmatpush3.bf16.msra.mxu1 %v4601_v41 }
0x14a3   : > { %4387 = vmatprep.subr.bf16.mxu1 %v4726_v3 }
0x14a6   : > { %4388 = vmatpush3.bf16.msra.mxu1 %v4602_v4 }
0x14a7   : > { %4389 = vmatprep.subr.bf16.mxu1 %v4726_v3 }
0x14aa   : > { %4390 = vmatpush3.bf16.msra.mxu1 %v4603_v46 }
0x14ab   : > { %4391 = vmatprep.subr.bf16.mxu1 %v4726_v3 }
0x14ae   : > { %4392 = vmatpush3.bf16.msra.mxu1 %v4604_v47 }
0x14af   : > { %4393 = vmatprep.subr.bf16.mxu1 %v4726_v3  ;;  %v4135_v3 = vld [vmem:[%s5668_s17] ss:$0 sm:$0xff] }
0x14b2   : > { %4394 = vmatpush3.bf16.msra.mxu1 %v4605_v49 }
0x152c   : > { %v3649_v63 = vpop.xlane.xlu0 %3648 }
0x152d   : > { %v3650_v36 = vmul.f32 0.0078125, %v3649_v63 }
0x152f   : > { %v3651_v38 = vsub.f32 %v3643_v58, %v3650_v36 }
0x1531   : > { %v3652_v40 = vmul.f32 %v3651_v38, %v3651_v38 }
0x1533   : > { %3653 = vadd.xlane.f32.xlu0 %v3652_v40 }
0x15c0   : > { %v3654_v45 = vpop.xlane.xlu0 %3653 }
0x15c1   : > { %v3655_v50 = vmul.f32 0.0078125, %v3654_v45 }
0x15c3   : > { %v3656_v43 = vadd.f32 1e-12, %v3655_v50 }
0x15c5   : > { %4646 = vrsqrt.f32 %v3656_v43 }
0x15cf   : > { %v4647_v11 = vpop.eup %4646 }
0x15d0   : > { %v3658_v52 = vmul.f32 %v4647_v11, %v3651_v38 }
0x15d2   : > { %v3665_v54 = vmul.f32 %v4133_v51, %v3658_v52 }
0x15d4   : > { %v3672_v44 = vadd.f32 %v4134_v53, %v3665_v54 }
0x15d6   : > { %v3673_v55 = vpack.c.bf16 %v3672_v44, %v3672_v44 }
0x15d8   : > { %4396 = vmatmul.mubr.bf16.vlgmr.msra.gmra.mrb[40].mxu1 %v3673_v55 }
0x16ab   : > { %v3779_v48 = vpop.f32.mrb[40].mxu1 }
0x16ac   : > { %v3780_v56 = vadd.f32 %v4135_v3, %v3779_v48  ;;  %v4397_v25 = vpop.f32.mrb[41].mxu1 }
0x16ad   : > { %v3782_v57 = vpop.f32.mrb[42].mxu1 }
0x16ae   : > { %3785 = vst [vmem:[%s614_s22] sm:$0xff] %v3780_v56  ;;  %v4398_v59 = vpop.f32.mrb[43].mxu1 }
0x16af PF: > { %s5689_s23 = sld [smem:[#allocation8_spill]] }
0x16b5   : > { %s30_s27 = sadd.s32 1, %s5689_s23  }
0x16b6   : > { %p27_p5 = scmp.ge.s32.totalorder %s30_s27, 4  }
0x16b8   :  { %29 = sbr.rel (!%p27_p5) target bundleno = 7 (0x7), region = 146 }
0x16bf   :  { %3805 = vsyncpa [#allocation3], 1 }
0x16c0   :  { %3807 = vsyncpa [#allocation3 + $0x1], 1 }
0x16c1   :  { %3808 = vsyncpa [#allocation5], 1 }

</bundles_post_ra>
